<compile_context>
chip_gen: v5e
topology: v5e:2x2
jax: 0.10.0
libtpu: 0.0.40
codegen_flags: <defaults>
</compile_context>

<pallas_src>
import functools

import jax
import jax.numpy as jnp
from jax.experimental import pallas as pl
from jax.experimental.pallas import tpu as pltpu

LN_EPS = 1e-5
VMEM_LIMIT = 64 * 1024 * 1024  # fits every generation (v7x has 64 MiB / TC)


# ------------------------------------------------------------------
# Pallas kernel: one full transformer encoder layer (MHA + FFN + 2x LN)
# Processes one batch element (full sequence) per grid step.
# ------------------------------------------------------------------
def encoder_layer_kernel(x_ref, maskadd_ref,
                         wq_ref, bq_ref, wk_ref, bk_ref, wv_ref, bv_ref,
                         wo_ref, bo_ref, ln1g_ref, ln1b_ref,
                         w1_ref, b1_ref, w2_ref, b2_ref,
                         ln2g_ref, ln2b_ref,
                         o_ref, *, nheads):
    x = x_ref[0]                       # (S, D) bf16
    mask_add = maskadd_ref[0]          # (1, S) f32 additive key mask
    S, D = x.shape
    H = nheads
    dh = D // H
    scale = 1.0 / (dh ** 0.5)

    def proj(w_ref, b_ref):
        # bf16 x bf16 -> f32 accumulate on the MXU, bias added in f32.
        y = jnp.dot(x, w_ref[...], preferred_element_type=jnp.float32)
        return y + b_ref[0]

    q = proj(wq_ref, bq_ref)           # (S, D) f32
    k = proj(wk_ref, bk_ref)
    v = proj(wv_ref, bv_ref)

    # Batch all heads into one einsum: (S, D) -> (H, S, dh).
    qh = jnp.transpose(q.reshape(S, H, dh), (1, 0, 2)).astype(jnp.bfloat16)
    kh = jnp.transpose(k.reshape(S, H, dh), (1, 0, 2)).astype(jnp.bfloat16)
    vh = jnp.transpose(v.reshape(S, H, dh), (1, 0, 2)).astype(jnp.bfloat16)

    s = jnp.einsum('hqd,hkd->hqk', qh, kh,
                   preferred_element_type=jnp.float32) * scale   # (H, S, S)
    s = s + mask_add                   # (1, S) broadcasts over heads/queries
    s = s - jnp.max(s, axis=-1, keepdims=True)
    p = jnp.exp(s)
    p = p * pl.reciprocal(jnp.sum(p, axis=-1, keepdims=True), approx=True)

    attn = jnp.einsum('hqk,hkd->hqd', p.astype(jnp.bfloat16), vh,
                      preferred_element_type=jnp.float32)        # (H, S, dh)
    attn = jnp.transpose(attn, (1, 0, 2)).reshape(S, D)
    attn = (jnp.dot(attn.astype(jnp.bfloat16), wo_ref[...],
                    preferred_element_type=jnp.float32) + bo_ref[0])

    def layer_norm(y, g_ref, b_ref):
        mu = jnp.mean(y, axis=-1, keepdims=True)
        var = jnp.mean((y - mu) ** 2, axis=-1, keepdims=True)
        return (y - mu) * jax.lax.rsqrt(var + LN_EPS) * g_ref[0] + b_ref[0]

    x1 = layer_norm(x.astype(jnp.float32) + attn, ln1g_ref, ln1b_ref)

    h1 = (jnp.dot(x1.astype(jnp.bfloat16), w1_ref[...],
                  preferred_element_type=jnp.float32) + b1_ref[0])
    h1 = jax.nn.gelu(h1, approximate=True)
    ff = (jnp.dot(h1.astype(jnp.bfloat16), w2_ref[...],
                  preferred_element_type=jnp.float32) + b2_ref[0])

    x2 = layer_norm(x1 + ff, ln2g_ref, ln2b_ref)
    o_ref[0] = x2.astype(o_ref.dtype)


def encoder_layer(x, mask_add3, layer_params, nheads):
    B, S, D = x.shape

    def resident_spec(a):
        nd = a.ndim
        return pl.BlockSpec(a.shape, lambda b, _nd=nd: (0,) * _nd)

    in_specs = ([pl.BlockSpec((1, S, D), lambda b: (b, 0, 0)),
                 pl.BlockSpec((1, 1, S), lambda b: (b, 0, 0))]
                + [resident_spec(p) for p in layer_params])

    kernel = functools.partial(encoder_layer_kernel, nheads=nheads)
    return pl.pallas_call(
        kernel,
        out_shape=jax.ShapeDtypeStruct((B, S, D), x.dtype),
        grid=(B,),
        in_specs=in_specs,
        out_specs=pl.BlockSpec((1, S, D), lambda b: (b, 0, 0)),
        compiler_params=pltpu.CompilerParams(
            dimension_semantics=("parallel",),
            vmem_limit_bytes=VMEM_LIMIT),
    )(x, mask_add3, *layer_params)


# ------------------------------------------------------------------
# Pallas kernel: tiled linear layer (used for the MLM vocab projection)
# ------------------------------------------------------------------
def linear_kernel(x_ref, w_ref, b_ref, o_ref):
    acc = jnp.dot(x_ref[...], w_ref[...], preferred_element_type=jnp.float32)
    o_ref[...] = (acc + b_ref[0]).astype(o_ref.dtype)


def _pick_tile(n, candidates):
    for c in candidates:
        if c <= n and n % c == 0:
            return c
    return n  # fall back to the full dim (always legal)


def linear(x2d, w, b, out_dtype=jnp.float32):
    N, D = x2d.shape
    V = w.shape[1]
    TM = _pick_tile(N, (512, 256, 128, 64, 32, 16, 8))
    TN = _pick_tile(V, (512, 256, 128))          # lane-dense (multiple of 128)
    grid = (N // TM, V // TN)
    return pl.pallas_call(
        linear_kernel,
        out_shape=jax.ShapeDtypeStruct((N, V), out_dtype),
        grid=grid,
        in_specs=[pl.BlockSpec((TM, D), lambda i, j: (i, 0)),
                  pl.BlockSpec((D, TN), lambda i, j: (0, j)),
                  pl.BlockSpec((1, TN), lambda i, j: (0, j))],
        out_specs=pl.BlockSpec((TM, TN), lambda i, j: (i, j)),
        compiler_params=pltpu.CompilerParams(
            dimension_semantics=("parallel", "parallel"),
            vmem_limit_bytes=VMEM_LIMIT),
    )(x2d, w, b)


# ------------------------------------------------------------------
# Parameter init (deterministic, synthetic).  Matmul weights in bf16,
# biases / LN params / embeddings in f32.
# ------------------------------------------------------------------
def init_params(key, vocab_size, d_model, nheads, n_layers, seq_len):
    d_ff = d_model * 4
    n_segments = 3

    def normal(key, shape, scale=0.02, dtype=jnp.bfloat16):
        return (scale * jax.random.normal(key, shape, dtype=jnp.float32)
                ).astype(dtype)

    keys = jax.random.split(key, 4 + n_layers)
    params = {
        'nheads': nheads,
        'tok_emb': normal(keys[0], (vocab_size, d_model), dtype=jnp.float32),
        'seg_emb': normal(keys[1], (n_segments, d_model), dtype=jnp.float32),
        'pos_emb': normal(keys[2], (seq_len, d_model), dtype=jnp.float32),
    }

    zeros = lambda shape: jnp.zeros(shape, jnp.float32)
    ones = lambda shape: jnp.ones(shape, jnp.float32)

    layers = []
    for li in range(n_layers):
        lk = jax.random.split(keys[4 + li], 8)
        layers.append((
            normal(lk[0], (d_model, d_model)), zeros((1, d_model)),   # Wq, bq
            normal(lk[1], (d_model, d_model)), zeros((1, d_model)),   # Wk, bk
            normal(lk[2], (d_model, d_model)), zeros((1, d_model)),   # Wv, bv
            normal(lk[3], (d_model, d_model)), zeros((1, d_model)),   # Wo, bo
            ones((1, d_model)), zeros((1, d_model)),                  # LN1
            normal(lk[4], (d_model, d_ff)), zeros((1, d_ff)),         # W1, b1
            normal(lk[5], (d_ff, d_model)), zeros((1, d_model)),      # W2, b2
            ones((1, d_model)), zeros((1, d_model)),                  # LN2
        ))
    params['layers'] = layers

    hk = jax.random.split(keys[3], 2)
    params['mlm_w'] = normal(hk[0], (d_model, vocab_size))
    params['mlm_b'] = zeros((1, vocab_size))
    params['nsp_w'] = normal(hk[1], (d_model, 2), dtype=jnp.float32)
    params['nsp_b'] = zeros((2,))
    return params


# ------------------------------------------------------------------
# Full BERT_NSP_MLM forward
# ------------------------------------------------------------------
def bert_nsp_mlm_forward(params, sequence, segment_label):
    B, S = sequence.shape
    # mask = (sequence == 0) -> additive key mask, shaped (B, 1, S).
    mask_add3 = jnp.where(sequence == 0, -1e9, 0.0
                          ).astype(jnp.float32)[:, None, :]

    # InputEmbedding (gathers are glue, done in plain JAX); dropout = identity.
    x = (params['tok_emb'][sequence]
         + params['seg_emb'][segment_label]
         + params['pos_emb'][None, :S, :]).astype(jnp.bfloat16)      # (B, S, D)

    for lp in params['layers']:
        x = encoder_layer(x, mask_add3, lp, params['nheads'])

    D = x.shape[-1]
    mlm = linear(x.reshape(B * S, D), params['mlm_w'], params['mlm_b'])
    mlm = mlm.reshape(B, S, -1)                                      # (B, S, V)

    # NSP head: 2-wide output -> plain JAX (per perf review; a Pallas call with
    # a 2-lane output is pure masked-store + launch overhead).
    cls = x[:, 0, :].astype(jnp.float32)
    nsp = cls @ params['nsp_w'].astype(jnp.float32) + params['nsp_b']  # (B, 2)
    return nsp, mlm


if __name__ == "__main__":
    vocab_size, d_model, nheads, n_layers, seq_len = 64, 32, 4, 2, 8
    batch = 2

    key = jax.random.PRNGKey(0)
    pkey, skey, gkey = jax.random.split(key, 3)

    params = init_params(pkey, vocab_size, d_model, nheads, n_layers, seq_len)

    sequence = jax.random.randint(skey, (batch, seq_len), 1, vocab_size,
                                  dtype=jnp.int32)
    # make the last two tokens of batch element 1 padding (id 0)
    sequence = sequence.at[1, -2:].set(0)
    segment_label = jnp.concatenate(
        [jnp.zeros((batch, seq_len // 2), jnp.int32),
         jnp.ones((batch, seq_len - seq_len // 2), jnp.int32)], axis=1)

    nsp_out, mlm_out = bert_nsp_mlm_forward(params, sequence, segment_label)
    jax.block_until_ready((nsp_out, mlm_out))

    assert nsp_out.shape == (batch, 2)
    assert mlm_out.shape == (batch, seq_len, vocab_size)
    assert jnp.all(jnp.isfinite(nsp_out)) and jnp.all(jnp.isfinite(mlm_out))
    print("KERNEL_OK")
</pallas_src>

<mosaic_0001>
module attributes {stable_mosaic.version = 11 : i64} {
  func.func @encoder_layer_kernel(%arg0: i32, %arg1: memref<1x8x32xbf16, #tpu.memory_space<vmem>>, %arg2: memref<1x1x8xf32, #tpu.memory_space<vmem>>, %arg3: memref<32x32xbf16, #tpu.memory_space<vmem>>, %arg4: memref<1x32xf32, #tpu.memory_space<vmem>>, %arg5: memref<32x32xbf16, #tpu.memory_space<vmem>>, %arg6: memref<1x32xf32, #tpu.memory_space<vmem>>, %arg7: memref<32x32xbf16, #tpu.memory_space<vmem>>, %arg8: memref<1x32xf32, #tpu.memory_space<vmem>>, %arg9: memref<32x32xbf16, #tpu.memory_space<vmem>>, %arg10: memref<1x32xf32, #tpu.memory_space<vmem>>, %arg11: memref<1x32xf32, #tpu.memory_space<vmem>>, %arg12: memref<1x32xf32, #tpu.memory_space<vmem>>, %arg13: memref<32x128xbf16, #tpu.memory_space<vmem>>, %arg14: memref<1x128xf32, #tpu.memory_space<vmem>>, %arg15: memref<128x32xbf16, #tpu.memory_space<vmem>>, %arg16: memref<1x32xf32, #tpu.memory_space<vmem>>, %arg17: memref<1x32xf32, #tpu.memory_space<vmem>>, %arg18: memref<1x32xf32, #tpu.memory_space<vmem>>, %arg19: memref<1x8x32xbf16, #tpu.memory_space<vmem>>) attributes {dimension_semantics = [#tpu.dimension_semantics<parallel>], iteration_bounds = array<i64: 2>, scalar_prefetch = 0 : i64, scratch_operands = 0 : i64, tpu.core_type = #tpu.core_type<tc>, window_params = [{transform_indices = @transform_0, window_bounds = array<i64: 1, 8, 32>}, {transform_indices = @transform_1, window_bounds = array<i64: 1, 1, 8>}, {pipeline_mode = #tpu.pipeline_mode<synchronous>, transform_indices = @transform_2, window_bounds = array<i64: 32, 32>}, {pipeline_mode = #tpu.pipeline_mode<synchronous>, transform_indices = @transform_3, window_bounds = array<i64: 1, 32>}, {pipeline_mode = #tpu.pipeline_mode<synchronous>, transform_indices = @transform_4, window_bounds = array<i64: 32, 32>}, {pipeline_mode = #tpu.pipeline_mode<synchronous>, transform_indices = @transform_5, window_bounds = array<i64: 1, 32>}, {pipeline_mode = #tpu.pipeline_mode<synchronous>, transform_indices = @transform_6, window_bounds = array<i64: 32, 32>}, {pipeline_mode = #tpu.pipeline_mode<synchronous>, transform_indices = @transform_7, window_bounds = array<i64: 1, 32>}, {pipeline_mode = #tpu.pipeline_mode<synchronous>, transform_indices = @transform_8, window_bounds = array<i64: 32, 32>}, {pipeline_mode = #tpu.pipeline_mode<synchronous>, transform_indices = @transform_9, window_bounds = array<i64: 1, 32>}, {pipeline_mode = #tpu.pipeline_mode<synchronous>, transform_indices = @transform_10, window_bounds = array<i64: 1, 32>}, {pipeline_mode = #tpu.pipeline_mode<synchronous>, transform_indices = @transform_11, window_bounds = array<i64: 1, 32>}, {pipeline_mode = #tpu.pipeline_mode<synchronous>, transform_indices = @transform_12, window_bounds = array<i64: 32, 128>}, {pipeline_mode = #tpu.pipeline_mode<synchronous>, transform_indices = @transform_13, window_bounds = array<i64: 1, 128>}, {pipeline_mode = #tpu.pipeline_mode<synchronous>, transform_indices = @transform_14, window_bounds = array<i64: 128, 32>}, {pipeline_mode = #tpu.pipeline_mode<synchronous>, transform_indices = @transform_15, window_bounds = array<i64: 1, 32>}, {pipeline_mode = #tpu.pipeline_mode<synchronous>, transform_indices = @transform_16, window_bounds = array<i64: 1, 32>}, {pipeline_mode = #tpu.pipeline_mode<synchronous>, transform_indices = @transform_17, window_bounds = array<i64: 1, 32>}, {transform_indices = @transform_18, window_bounds = array<i64: 1, 8, 32>}]} {
    %c0 = arith.constant 0 : index
    %c0_0 = arith.constant 0 : index
    %c0_1 = arith.constant 0 : index
    %0 = vector.load %arg1[%c0, %c0_0, %c0_1] : memref<1x8x32xbf16, #tpu.memory_space<vmem>>, vector<1x8x32xbf16>
    %1 = vector.shape_cast %0 : vector<1x8x32xbf16> to vector<8x32xbf16>
    %c0_2 = arith.constant 0 : index
    %c0_3 = arith.constant 0 : index
    %c0_4 = arith.constant 0 : index
    %2 = vector.load %arg2[%c0_2, %c0_3, %c0_4] : memref<1x1x8xf32, #tpu.memory_space<vmem>>, vector<1x1x8xf32>
    %3 = vector.shape_cast %2 : vector<1x1x8xf32> to vector<1x8xf32>
    %c0_5 = arith.constant 0 : index
    %c0_6 = arith.constant 0 : index
    %4 = vector.load %arg3[%c0_5, %c0_6] : memref<32x32xbf16, #tpu.memory_space<vmem>>, vector<32x32xbf16>
    %cst = arith.constant dense<0.000000e+00> : vector<8x32xf32>
    %5 = tpu.matmul %1, %4, %cst {dimension_numbers = #tpu.dot_dimension_numbers<[1], [0], [0], [1], [0, 0, 1, 1], [], []>} : vector<8x32xbf16>, vector<32x32xbf16>, vector<8x32xf32> -> vector<8x32xf32>
    %c0_7 = arith.constant 0 : index
    %c0_8 = arith.constant 0 : index
    %6 = vector.load %arg4[%c0_7, %c0_8] : memref<1x32xf32, #tpu.memory_space<vmem>>, vector<1x32xf32>
    %7 = vector.shape_cast %6 : vector<1x32xf32> to vector<32xf32>
    %8 = vector.shape_cast %7 : vector<32xf32> to vector<1x32xf32>
    %9 = vector.broadcast %8 : vector<1x32xf32> to vector<8x32xf32>
    %10 = arith.addf %5, %9 : vector<8x32xf32>
    %c0_9 = arith.constant 0 : index
    %c0_10 = arith.constant 0 : index
    %11 = vector.load %arg5[%c0_9, %c0_10] : memref<32x32xbf16, #tpu.memory_space<vmem>>, vector<32x32xbf16>
    %cst_11 = arith.constant dense<0.000000e+00> : vector<8x32xf32>
    %12 = tpu.matmul %1, %11, %cst_11 {dimension_numbers = #tpu.dot_dimension_numbers<[1], [0], [0], [1], [0, 0, 1, 1], [], []>} : vector<8x32xbf16>, vector<32x32xbf16>, vector<8x32xf32> -> vector<8x32xf32>
    %c0_12 = arith.constant 0 : index
    %c0_13 = arith.constant 0 : index
    %13 = vector.load %arg6[%c0_12, %c0_13] : memref<1x32xf32, #tpu.memory_space<vmem>>, vector<1x32xf32>
    %14 = vector.shape_cast %13 : vector<1x32xf32> to vector<32xf32>
    %15 = vector.shape_cast %14 : vector<32xf32> to vector<1x32xf32>
    %16 = vector.broadcast %15 : vector<1x32xf32> to vector<8x32xf32>
    %17 = arith.addf %12, %16 : vector<8x32xf32>
    %c0_14 = arith.constant 0 : index
    %c0_15 = arith.constant 0 : index
    %18 = vector.load %arg7[%c0_14, %c0_15] : memref<32x32xbf16, #tpu.memory_space<vmem>>, vector<32x32xbf16>
    %cst_16 = arith.constant dense<0.000000e+00> : vector<8x32xf32>
    %19 = tpu.matmul %1, %18, %cst_16 {dimension_numbers = #tpu.dot_dimension_numbers<[1], [0], [0], [1], [0, 0, 1, 1], [], []>} : vector<8x32xbf16>, vector<32x32xbf16>, vector<8x32xf32> -> vector<8x32xf32>
    %c0_17 = arith.constant 0 : index
    %c0_18 = arith.constant 0 : index
    %20 = vector.load %arg8[%c0_17, %c0_18] : memref<1x32xf32, #tpu.memory_space<vmem>>, vector<1x32xf32>
    %21 = vector.shape_cast %20 : vector<1x32xf32> to vector<32xf32>
    %22 = vector.shape_cast %21 : vector<32xf32> to vector<1x32xf32>
    %23 = vector.broadcast %22 : vector<1x32xf32> to vector<8x32xf32>
    %24 = arith.addf %19, %23 : vector<8x32xf32>
    %25 = vector.shape_cast %10 : vector<8x32xf32> to vector<8x4x8xf32>
    %26 = tpu.transpose %25, [1, 0, 2] : vector<8x4x8xf32> -> vector<4x8x8xf32>
    %27 = arith.truncf %26 : vector<4x8x8xf32> to vector<4x8x8xbf16>
    %28 = vector.shape_cast %17 : vector<8x32xf32> to vector<8x4x8xf32>
    %29 = tpu.transpose %28, [1, 0, 2] : vector<8x4x8xf32> -> vector<4x8x8xf32>
    %30 = arith.truncf %29 : vector<4x8x8xf32> to vector<4x8x8xbf16>
    %31 = vector.shape_cast %24 : vector<8x32xf32> to vector<8x4x8xf32>
    %32 = tpu.transpose %31, [1, 0, 2] : vector<8x4x8xf32> -> vector<4x8x8xf32>
    %33 = arith.truncf %32 : vector<4x8x8xf32> to vector<4x8x8xbf16>
    "tpu.trace_start"() <{level = 10 : i32, message = "hqd,hkd->hqk"}> : () -> ()
    %cst_19 = arith.constant dense<0.000000e+00> : vector<4x8x8xf32>
    %34 = tpu.matmul %27, %30, %cst_19 {dimension_numbers = #tpu.dot_dimension_numbers<[2], [2], [1], [1], [0, 0, 0, 1, 1, 1], [0], [0]>} : vector<4x8x8xbf16>, vector<4x8x8xbf16>, vector<4x8x8xf32> -> vector<4x8x8xf32>
    "tpu.trace_stop"() : () -> ()
    %cst_20 = arith.constant 0.353553385 : f32
    %35 = vector.broadcast %cst_20 : f32 to vector<4x8x8xf32>
    %36 = arith.mulf %34, %35 : vector<4x8x8xf32>
    %37 = vector.shape_cast %3 : vector<1x8xf32> to vector<1x1x8xf32>
    %38 = vector.broadcast %37 : vector<1x1x8xf32> to vector<4x8x8xf32>
    %39 = arith.addf %36, %38 : vector<4x8x8xf32>
    %cst_21 = arith.constant dense<0xFF800000> : vector<4x8xf32>
    %40 = vector.multi_reduction <maximumf>, %39, %cst_21 [2] : vector<4x8x8xf32> to vector<4x8xf32>
    %41 = vector.shape_cast %40 : vector<4x8xf32> to vector<4x8x1xf32>
    %42 = vector.broadcast %41 : vector<4x8x1xf32> to vector<4x8x8xf32>
    %43 = arith.subf %39, %42 : vector<4x8x8xf32>
    %44 = math.exp %43 : vector<4x8x8xf32>
    %cst_22 = arith.constant dense<0.000000e+00> : vector<4x8xf32>
    %45 = vector.multi_reduction <add>, %44, %cst_22 [2] : vector<4x8x8xf32> to vector<4x8xf32>
    %46 = vector.shape_cast %45 : vector<4x8xf32> to vector<4x8x1xf32>
    %47 = tpu.reciprocal %46 {approx = true} : vector<4x8x1xf32> -> vector<4x8x1xf32>
    %48 = vector.broadcast %47 : vector<4x8x1xf32> to vector<4x8x8xf32>
    %49 = arith.mulf %44, %48 : vector<4x8x8xf32>
    %50 = arith.truncf %49 : vector<4x8x8xf32> to vector<4x8x8xbf16>
    "tpu.trace_start"() <{level = 10 : i32, message = "hqk,hkd->hqd"}> : () -> ()
    %cst_23 = arith.constant dense<0.000000e+00> : vector<4x8x8xf32>
    %51 = tpu.matmul %50, %33, %cst_23 {dimension_numbers = #tpu.dot_dimension_numbers<[2], [1], [1], [2], [0, 0, 0, 1, 1, 2], [0], [0]>} : vector<4x8x8xbf16>, vector<4x8x8xbf16>, vector<4x8x8xf32> -> vector<4x8x8xf32>
    "tpu.trace_stop"() : () -> ()
    %52 = tpu.transpose %51, [1, 0, 2] : vector<4x8x8xf32> -> vector<8x4x8xf32>
    %53 = vector.shape_cast %52 : vector<8x4x8xf32> to vector<8x32xf32>
    %54 = arith.truncf %53 : vector<8x32xf32> to vector<8x32xbf16>
    %c0_24 = arith.constant 0 : index
    %c0_25 = arith.constant 0 : index
    %55 = vector.load %arg9[%c0_24, %c0_25] : memref<32x32xbf16, #tpu.memory_space<vmem>>, vector<32x32xbf16>
    %cst_26 = arith.constant dense<0.000000e+00> : vector<8x32xf32>
    %56 = tpu.matmul %54, %55, %cst_26 {dimension_numbers = #tpu.dot_dimension_numbers<[1], [0], [0], [1], [0, 0, 1, 1], [], []>} : vector<8x32xbf16>, vector<32x32xbf16>, vector<8x32xf32> -> vector<8x32xf32>
    %c0_27 = arith.constant 0 : index
    %c0_28 = arith.constant 0 : index
    %57 = vector.load %arg10[%c0_27, %c0_28] : memref<1x32xf32, #tpu.memory_space<vmem>>, vector<1x32xf32>
    %58 = vector.shape_cast %57 : vector<1x32xf32> to vector<32xf32>
    %59 = vector.shape_cast %58 : vector<32xf32> to vector<1x32xf32>
    %60 = vector.broadcast %59 : vector<1x32xf32> to vector<8x32xf32>
    %61 = arith.addf %56, %60 : vector<8x32xf32>
    %62 = arith.extf %1 : vector<8x32xbf16> to vector<8x32xf32>
    %63 = arith.addf %62, %61 : vector<8x32xf32>
    %cst_29 = arith.constant dense<0.000000e+00> : vector<8xf32>
    %64 = vector.multi_reduction <add>, %63, %cst_29 [1] : vector<8x32xf32> to vector<8xf32>
    %65 = vector.shape_cast %64 : vector<8xf32> to vector<8x1xf32>
    %cst_30 = arith.constant 3.200000e+01 : f32
    %66 = vector.broadcast %cst_30 : f32 to vector<8x1xf32>
    %67 = arith.divf %65, %66 : vector<8x1xf32>
    %68 = vector.broadcast %67 : vector<8x1xf32> to vector<8x32xf32>
    %69 = arith.subf %63, %68 : vector<8x32xf32>
    %70 = arith.mulf %69, %69 : vector<8x32xf32>
    %cst_31 = arith.constant dense<0.000000e+00> : vector<8xf32>
    %71 = vector.multi_reduction <add>, %70, %cst_31 [1] : vector<8x32xf32> to vector<8xf32>
    %72 = vector.shape_cast %71 : vector<8xf32> to vector<8x1xf32>
    %cst_32 = arith.constant 3.200000e+01 : f32
    %73 = vector.broadcast %cst_32 : f32 to vector<8x1xf32>
    %74 = arith.divf %72, %73 : vector<8x1xf32>
    %75 = vector.broadcast %67 : vector<8x1xf32> to vector<8x32xf32>
    %76 = arith.subf %63, %75 : vector<8x32xf32>
    %cst_33 = arith.constant 9.99999974E-6 : f32
    %77 = vector.broadcast %cst_33 : f32 to vector<8x1xf32>
    %78 = arith.addf %74, %77 : vector<8x1xf32>
    %79 = math.rsqrt %78 : vector<8x1xf32>
    %80 = vector.broadcast %79 : vector<8x1xf32> to vector<8x32xf32>
    %81 = arith.mulf %76, %80 : vector<8x32xf32>
    %c0_34 = arith.constant 0 : index
    %c0_35 = arith.constant 0 : index
    %82 = vector.load %arg11[%c0_34, %c0_35] : memref<1x32xf32, #tpu.memory_space<vmem>>, vector<1x32xf32>
    %83 = vector.shape_cast %82 : vector<1x32xf32> to vector<32xf32>
    %84 = vector.shape_cast %83 : vector<32xf32> to vector<1x32xf32>
    %85 = vector.broadcast %84 : vector<1x32xf32> to vector<8x32xf32>
    %86 = arith.mulf %81, %85 : vector<8x32xf32>
    %c0_36 = arith.constant 0 : index
    %c0_37 = arith.constant 0 : index
    %87 = vector.load %arg12[%c0_36, %c0_37] : memref<1x32xf32, #tpu.memory_space<vmem>>, vector<1x32xf32>
    %88 = vector.shape_cast %87 : vector<1x32xf32> to vector<32xf32>
    %89 = vector.shape_cast %88 : vector<32xf32> to vector<1x32xf32>
    %90 = vector.broadcast %89 : vector<1x32xf32> to vector<8x32xf32>
    %91 = arith.addf %86, %90 : vector<8x32xf32>
    %92 = arith.truncf %91 : vector<8x32xf32> to vector<8x32xbf16>
    %c0_38 = arith.constant 0 : index
    %c0_39 = arith.constant 0 : index
    %93 = vector.load %arg13[%c0_38, %c0_39] : memref<32x128xbf16, #tpu.memory_space<vmem>>, vector<32x128xbf16>
    %cst_40 = arith.constant dense<0.000000e+00> : vector<8x128xf32>
    %94 = tpu.matmul %92, %93, %cst_40 {dimension_numbers = #tpu.dot_dimension_numbers<[1], [0], [0], [1], [0, 0, 1, 1], [], []>} : vector<8x32xbf16>, vector<32x128xbf16>, vector<8x128xf32> -> vector<8x128xf32>
    %c0_41 = arith.constant 0 : index
    %c0_42 = arith.constant 0 : index
    %95 = vector.load %arg14[%c0_41, %c0_42] : memref<1x128xf32, #tpu.memory_space<vmem>>, vector<1x128xf32>
    %96 = vector.shape_cast %95 : vector<1x128xf32> to vector<128xf32>
    %97 = vector.shape_cast %96 : vector<128xf32> to vector<1x128xf32>
    %98 = vector.broadcast %97 : vector<1x128xf32> to vector<8x128xf32>
    %99 = arith.addf %94, %98 : vector<8x128xf32>
    %100 = arith.mulf %99, %99 : vector<8x128xf32>
    %101 = arith.mulf %99, %100 : vector<8x128xf32>
    %cst_43 = arith.constant 4.471500e-02 : f32
    %102 = vector.broadcast %cst_43 : f32 to vector<8x128xf32>
    %103 = arith.mulf %102, %101 : vector<8x128xf32>
    %104 = arith.addf %99, %103 : vector<8x128xf32>
    %cst_44 = arith.constant 0.797884583 : f32
    %105 = vector.broadcast %cst_44 : f32 to vector<8x128xf32>
    %106 = arith.mulf %105, %104 : vector<8x128xf32>
    %107 = math.tanh %106 : vector<8x128xf32>
    %cst_45 = arith.constant 1.000000e+00 : f32
    %108 = vector.broadcast %cst_45 : f32 to vector<8x128xf32>
    %109 = arith.addf %108, %107 : vector<8x128xf32>
    %cst_46 = arith.constant 5.000000e-01 : f32
    %110 = vector.broadcast %cst_46 : f32 to vector<8x128xf32>
    %111 = arith.mulf %110, %109 : vector<8x128xf32>
    %112 = arith.mulf %99, %111 : vector<8x128xf32>
    %113 = arith.truncf %112 : vector<8x128xf32> to vector<8x128xbf16>
    %c0_47 = arith.constant 0 : index
    %c0_48 = arith.constant 0 : index
    %114 = vector.load %arg15[%c0_47, %c0_48] : memref<128x32xbf16, #tpu.memory_space<vmem>>, vector<128x32xbf16>
    %cst_49 = arith.constant dense<0.000000e+00> : vector<8x32xf32>
    %115 = tpu.matmul %113, %114, %cst_49 {dimension_numbers = #tpu.dot_dimension_numbers<[1], [0], [0], [1], [0, 0, 1, 1], [], []>} : vector<8x128xbf16>, vector<128x32xbf16>, vector<8x32xf32> -> vector<8x32xf32>
    %c0_50 = arith.constant 0 : index
    %c0_51 = arith.constant 0 : index
    %116 = vector.load %arg16[%c0_50, %c0_51] : memref<1x32xf32, #tpu.memory_space<vmem>>, vector<1x32xf32>
    %117 = vector.shape_cast %116 : vector<1x32xf32> to vector<32xf32>
    %118 = vector.shape_cast %117 : vector<32xf32> to vector<1x32xf32>
    %119 = vector.broadcast %118 : vector<1x32xf32> to vector<8x32xf32>
    %120 = arith.addf %115, %119 : vector<8x32xf32>
    %121 = arith.addf %91, %120 : vector<8x32xf32>
    %cst_52 = arith.constant dense<0.000000e+00> : vector<8xf32>
    %122 = vector.multi_reduction <add>, %121, %cst_52 [1] : vector<8x32xf32> to vector<8xf32>
    %123 = vector.shape_cast %122 : vector<8xf32> to vector<8x1xf32>
    %cst_53 = arith.constant 3.200000e+01 : f32
    %124 = vector.broadcast %cst_53 : f32 to vector<8x1xf32>
    %125 = arith.divf %123, %124 : vector<8x1xf32>
    %126 = vector.broadcast %125 : vector<8x1xf32> to vector<8x32xf32>
    %127 = arith.subf %121, %126 : vector<8x32xf32>
    %128 = arith.mulf %127, %127 : vector<8x32xf32>
    %cst_54 = arith.constant dense<0.000000e+00> : vector<8xf32>
    %129 = vector.multi_reduction <add>, %128, %cst_54 [1] : vector<8x32xf32> to vector<8xf32>
    %130 = vector.shape_cast %129 : vector<8xf32> to vector<8x1xf32>
    %cst_55 = arith.constant 3.200000e+01 : f32
    %131 = vector.broadcast %cst_55 : f32 to vector<8x1xf32>
    %132 = arith.divf %130, %131 : vector<8x1xf32>
    %133 = vector.broadcast %125 : vector<8x1xf32> to vector<8x32xf32>
    %134 = arith.subf %121, %133 : vector<8x32xf32>
    %cst_56 = arith.constant 9.99999974E-6 : f32
    %135 = vector.broadcast %cst_56 : f32 to vector<8x1xf32>
    %136 = arith.addf %132, %135 : vector<8x1xf32>
    %137 = math.rsqrt %136 : vector<8x1xf32>
    %138 = vector.broadcast %137 : vector<8x1xf32> to vector<8x32xf32>
    %139 = arith.mulf %134, %138 : vector<8x32xf32>
    %c0_57 = arith.constant 0 : index
    %c0_58 = arith.constant 0 : index
    %140 = vector.load %arg17[%c0_57, %c0_58] : memref<1x32xf32, #tpu.memory_space<vmem>>, vector<1x32xf32>
    %141 = vector.shape_cast %140 : vector<1x32xf32> to vector<32xf32>
    %142 = vector.shape_cast %141 : vector<32xf32> to vector<1x32xf32>
    %143 = vector.broadcast %142 : vector<1x32xf32> to vector<8x32xf32>
    %144 = arith.mulf %139, %143 : vector<8x32xf32>
    %c0_59 = arith.constant 0 : index
    %c0_60 = arith.constant 0 : index
    %145 = vector.load %arg18[%c0_59, %c0_60] : memref<1x32xf32, #tpu.memory_space<vmem>>, vector<1x32xf32>
    %146 = vector.shape_cast %145 : vector<1x32xf32> to vector<32xf32>
    %147 = vector.shape_cast %146 : vector<32xf32> to vector<1x32xf32>
    %148 = vector.broadcast %147 : vector<1x32xf32> to vector<8x32xf32>
    %149 = arith.addf %144, %148 : vector<8x32xf32>
    %150 = arith.truncf %149 : vector<8x32xf32> to vector<8x32xbf16>
    %c0_61 = arith.constant 0 : index
    %c0_62 = arith.constant 0 : index
    %c0_63 = arith.constant 0 : index
    %151 = vector.load %arg19[%c0_61, %c0_62, %c0_63] : memref<1x8x32xbf16, #tpu.memory_space<vmem>>, vector<1x8x32xbf16>
    %152 = vector.shape_cast %151 : vector<1x8x32xbf16> to vector<8x32xbf16>
    %153 = vector.shape_cast %150 : vector<8x32xbf16> to vector<1x8x32xbf16>
    tpu.vector_store %arg19[%c0_61, %c0_62, %c0_63], %153 {strides = array<i32>} : memref<1x8x32xbf16, #tpu.memory_space<vmem>>, vector<1x8x32xbf16>,
    return
  }
  func.func @transform_0(%arg0: i32) -> (i32, i32, i32) {
    %c0_i32 = arith.constant 0 : i32
    %c0_i32_0 = arith.constant 0 : i32
    %c0_i32_1 = arith.constant 0 : i32
    return %arg0, %c0_i32, %c0_i32_0 : i32, i32, i32
  }
  func.func @transform_1(%arg0: i32) -> (i32, i32, i32) {
    %c0_i32 = arith.constant 0 : i32
    %c0_i32_0 = arith.constant 0 : i32
    %c0_i32_1 = arith.constant 0 : i32
    return %arg0, %c0_i32, %c0_i32_0 : i32, i32, i32
  }
  func.func @transform_2(%arg0: i32) -> (i32, i32) {
    %c0_i32 = arith.constant 0 : i32
    %c0_i32_0 = arith.constant 0 : i32
    %c0_i32_1 = arith.constant 0 : i32
    return %c0_i32, %c0_i32_0 : i32, i32
  }
  func.func @transform_3(%arg0: i32) -> (i32, i32) {
    %c0_i32 = arith.constant 0 : i32
    %c0_i32_0 = arith.constant 0 : i32
    %c0_i32_1 = arith.constant 0 : i32
    return %c0_i32, %c0_i32_0 : i32, i32
  }
  func.func @transform_4(%arg0: i32) -> (i32, i32) {
    %c0_i32 = arith.constant 0 : i32
    %c0_i32_0 = arith.constant 0 : i32
    %c0_i32_1 = arith.constant 0 : i32
    return %c0_i32, %c0_i32_0 : i32, i32
  }
  func.func @transform_5(%arg0: i32) -> (i32, i32) {
    %c0_i32 = arith.constant 0 : i32
    %c0_i32_0 = arith.constant 0 : i32
    %c0_i32_1 = arith.constant 0 : i32
    return %c0_i32, %c0_i32_0 : i32, i32
  }
  func.func @transform_6(%arg0: i32) -> (i32, i32) {
    %c0_i32 = arith.constant 0 : i32
    %c0_i32_0 = arith.constant 0 : i32
    %c0_i32_1 = arith.constant 0 : i32
    return %c0_i32, %c0_i32_0 : i32, i32
  }
  func.func @transform_7(%arg0: i32) -> (i32, i32) {
    %c0_i32 = arith.constant 0 : i32
    %c0_i32_0 = arith.constant 0 : i32
    %c0_i32_1 = arith.constant 0 : i32
    return %c0_i32, %c0_i32_0 : i32, i32
  }
  func.func @transform_8(%arg0: i32) -> (i32, i32) {
    %c0_i32 = arith.constant 0 : i32
    %c0_i32_0 = arith.constant 0 : i32
    %c0_i32_1 = arith.constant 0 : i32
    return %c0_i32, %c0_i32_0 : i32, i32
  }
  func.func @transform_9(%arg0: i32) -> (i32, i32) {
    %c0_i32 = arith.constant 0 : i32
    %c0_i32_0 = arith.constant 0 : i32
    %c0_i32_1 = arith.constant 0 : i32
    return %c0_i32, %c0_i32_0 : i32, i32
  }
  func.func @transform_10(%arg0: i32) -> (i32, i32) {
    %c0_i32 = arith.constant 0 : i32
    %c0_i32_0 = arith.constant 0 : i32
    %c0_i32_1 = arith.constant 0 : i32
    return %c0_i32, %c0_i32_0 : i32, i32
  }
  func.func @transform_11(%arg0: i32) -> (i32, i32) {
    %c0_i32 = arith.constant 0 : i32
    %c0_i32_0 = arith.constant 0 : i32
    %c0_i32_1 = arith.constant 0 : i32
    return %c0_i32, %c0_i32_0 : i32, i32
  }
  func.func @transform_12(%arg0: i32) -> (i32, i32) {
    %c0_i32 = arith.constant 0 : i32
    %c0_i32_0 = arith.constant 0 : i32
    %c0_i32_1 = arith.constant 0 : i32
    return %c0_i32, %c0_i32_0 : i32, i32
  }
  func.func @transform_13(%arg0: i32) -> (i32, i32) {
    %c0_i32 = arith.constant 0 : i32
    %c0_i32_0 = arith.constant 0 : i32
    %c0_i32_1 = arith.constant 0 : i32
    return %c0_i32, %c0_i32_0 : i32, i32
  }
  func.func @transform_14(%arg0: i32) -> (i32, i32) {
    %c0_i32 = arith.constant 0 : i32
    %c0_i32_0 = arith.constant 0 : i32
    %c0_i32_1 = arith.constant 0 : i32
    return %c0_i32, %c0_i32_0 : i32, i32
  }
  func.func @transform_15(%arg0: i32) -> (i32, i32) {
    %c0_i32 = arith.constant 0 : i32
    %c0_i32_0 = arith.constant 0 : i32
    %c0_i32_1 = arith.constant 0 : i32
    return %c0_i32, %c0_i32_0 : i32, i32
  }
  func.func @transform_16(%arg0: i32) -> (i32, i32) {
    %c0_i32 = arith.constant 0 : i32
    %c0_i32_0 = arith.constant 0 : i32
    %c0_i32_1 = arith.constant 0 : i32
    return %c0_i32, %c0_i32_0 : i32, i32
  }
  func.func @transform_17(%arg0: i32) -> (i32, i32) {
    %c0_i32 = arith.constant 0 : i32
    %c0_i32_0 = arith.constant 0 : i32
    %c0_i32_1 = arith.constant 0 : i32
    return %c0_i32, %c0_i32_0 : i32, i32
  }
  func.func @transform_18(%arg0: i32) -> (i32, i32, i32) {
    %c0_i32 = arith.constant 0 : i32
    %c0_i32_0 = arith.constant 0 : i32
    %c0_i32_1 = arith.constant 0 : i32
    return %arg0, %c0_i32, %c0_i32_0 : i32, i32, i32
  }
}

</mosaic_0001>

<bundles_post_ra>
// kernel: tpu_custom_call.1
= control target key start
LH: loop header
LB: loop body
LE: loop exit
PB: predicated region body
PF: predicated region fallthrough
CT: control target
= control target key end

     0   :  { %s2728_s0 = inlined_call_operand.hbm [shape: bf16[2,8,32], index: 0, kind: input, shape index: {}]   ;;  %s2729_s1 = inlined_call_operand.hbm [shape: f32[2,1,8], index: 1, kind: input, shape index: {}]   ;;  %s2730_s2 = inlined_call_operand.vmem [shape: bf16[32,32], index: 2, kind: input, shape index: {}]   ;;  %s2731_s3 = inlined_call_operand.vmem [shape: f32[1,32], index: 3, kind: input, shape index: {}]   ;;  %s2732_s4 = inlined_call_operand.vmem [shape: bf16[32,32], index: 4, kind: input, shape index: {}]   ;;  %s2733_s5 = inlined_call_operand.vmem [shape: f32[1,32], index: 5, kind: input, shape index: {}]   ;;  %s2734_s6 = inlined_call_operand.vmem [shape: bf16[32,32], index: 6, kind: input, shape index: {}]   ;;  %s2735_s7 = inlined_call_operand.vmem [shape: f32[1,32], index: 7, kind: input, shape index: {}]   ;;  %s2736_s8 = inlined_call_operand.vmem [shape: bf16[32,32], index: 8, kind: input, shape index: {}]   ;;  %s2737_s9 = inlined_call_operand.vmem [shape: f32[1,32], index: 9, kind: input, shape index: {}]   ;;  %s2738_s10 = inlined_call_operand.vmem [shape: f32[1,32], index: 10, kind: input, shape index: {}]   ;;  %s2739_s11 = inlined_call_operand.vmem [shape: f32[1,32], index: 11, kind: input, shape index: {}]   ;;  %s2740_s12 = inlined_call_operand.vmem [shape: bf16[32,128], index: 12, kind: input, shape index: {}]   ;;  %s2741_s13 = inlined_call_operand.vmem [shape: f32[1,128], index: 13, kind: input, shape index: {}]   ;;  %s2742_s14 = inlined_call_operand.vmem [shape: bf16[128,32], index: 14, kind: input, shape index: {}]   ;;  %s2743_s15 = inlined_call_operand.vmem [shape: f32[1,32], index: 15, kind: input, shape index: {}]   ;;  %s2744_s16 = inlined_call_operand.vmem [shape: f32[1,32], index: 16, kind: input, shape index: {}]   ;;  %s2745_s17 = inlined_call_operand.vmem [shape: f32[1,32], index: 17, kind: input, shape index: {}]   ;;  %s2746_s18 = inlined_call_operand.hbm [shape: bf16[2,8,32], index: 18, kind: output, shape index: {}]  }
   0x1   :  { %2761 = sst [smem:[#allocation18_spill]] %s2728_s0 }
   0x2   :  { %2762 = sst [smem:[#allocation19_spill]] %s2729_s1 }
   0x3   :  { %2763 = sst [smem:[#allocation20_spill]] %s2730_s2 }
   0x4   :  { %2764 = sst [smem:[#allocation21_spill]] %s2731_s3 }
   0x5   :  { %2765 = sst [smem:[#allocation22_spill]] %s2732_s4 }
   0x6   :  { %2766 = sst [smem:[#allocation23_spill]] %s2733_s5 }
   0x7   :  { %2767 = sst [smem:[#allocation24_spill]] %s2743_s15 }
   0x8   :  { %2768 = sst [smem:[#allocation25_spill]] %s2744_s16 }
   0x9   :  { %2769 = sst [smem:[#allocation26_spill]] %s2745_s17 }
   0xa   :  { %2770 = sst [smem:[#allocation27_spill]] %s2746_s18 }
   0xb   :  { %23 = vsyncpa [#allocation3], 0 }
   0xc   :  { %25 = vsyncpa [#allocation3 + $0x1], 0 }
   0xd   :  { %26 = vsyncpa [#allocation6], 0 }
   0xe   :  { %28 = vsyncpa [#allocation6 + $0x1], 0 }
   0xf   :  { %29 = vsyncpa [#allocation4], 0 }
  0x10   :  { %31 = vsyncpa [#allocation4 + $0x1], 0  ;;  %s2240_s27 = smov 0   ;;  %s2242_s28 = smov 0  }
  0x11   :  { %s2244_s29 = smov 0   ;;  %s2246_s30 = smov 0  }
  0x12 LB: > { %2771 = sst [smem:[#allocation11_spill]] %s2122_s27  ;;  %s2261_s0 = sadd.s32 4294967295, %s2134_s30   ;;  %s2134_s30 = sphi %s2246_s30, %s2801_s30   ;;  %s2130_s29 = sphi %s2244_s29, %s2803_s29   ;;  %s2126_s28 = sphi %s2242_s28, %s2805_s28   ;;  %s2122_s27 = sphi %s2240_s27, %s2804_s27  }
  0x13   : > { %2772 = sst [smem:[#allocation12_spill]] %s2130_s29  ;;  %s1794_s19 = sadd.s32 4294967294, %s2134_s30  }
  0x14   : > { %2773 = sst [smem:[#allocation13_spill]] %s2261_s0  ;;  %s2265_s1 = sadd.s32 1, %s2134_s30  }
  0x15   : > { %2774 = sst [smem:[#allocation14_spill]] %s2265_s1  ;;  %s44_s20 = sadd.s32 1, %s2130_s29 }
  0x16   : > { %s41_s21 = ssub.s32 %s2134_s30, %s2265_s1  ;;  %p51_p0 = scmp.ne.s32.totalorder %s2130_s29, %s2126_s28 }
  0x17   : > { %p42_p1 = scmp.eq.s32.totalorder %s41_s21, 0  ;;  %p52_p2 = scmp.eq.s32.totalorder %s2134_s30, 0 }
  0x18   : > { %p57_p3 = scmp.ne.s32.totalorder %s2126_s28, %s2122_s27  ;;  %p58_p4 = scmp.eq.s32.totalorder %s2261_s0, 0 }
  0x19   : > { %s2277_s22 = scalar_select %p42_p1, %s2130_s29, %s44_s20  }
  0x1a   : > { %p2279_p5 = por %p52_p2, %p51_p0  ;;  %p2283_p6 = por %p58_p4, %p57_p3 }
  0x1b   : > { %2775 = sst [smem:[#allocation15_spill]] %s2277_s22  ;;  %p443_p7 = scmp.eq.s32.totalorder %s2261_s0, 1 }
  0x1c   : > { %p449_p8 = scmp.eq.s32.totalorder %s1794_s19, 1  ;;  %p1926_p10 = scmp.lt.s32.totalorder %s2134_s30, 2 }
  0x1d   : > { %p2290_p11 = por %p443_p7, %p51_p0  ;;  %s2299_s26 = sand.u32 1, %s2130_s29  }
  0x1e   : > { %p2294_p12 = por %p449_p8, %p57_p3  ;;  %s1798_s20 = sshll.u32 %s2134_s30, 2 }
  0x1f   : > { %s2778_s24 = scalar_select %p2290_p11, 1, 0 }
  0x20   : > { %s2780_s25 = scalar_select %p2294_p12, 1, 0 }
  0x21   : > { %2779 = sst [smem:[#allocation16_spill]] %s2778_s24  ;;  %s1797_s21 = sshll.u32 %s2299_s26, 2 }
  0x22   : > { %2781 = sst [smem:[#allocation17_spill]] %s2780_s25  ;;  %s521_s17 = scalar_lea.vmem [#allocation2], %s1797_s21 }
  0x23   : > { %s2782_s19 = sld [smem:[#allocation18_spill]]  ;;  %s529_s16 = sshll.u32 %s521_s17, 4  ;;  %s530_s16 = int_to_ptr.vmem [resolvable:$true] %s529_s16 }
  0x24   : > { %p2308_p13 = pnand %p1926_p10, %p2279_p5  ;;  %p1799_p0 = scmp.ge.s32.totalorder %s2134_s30, 1 }
  0x25   : > { %p551_p1 = scmp.lt.s32.totalorder %s2134_s30, 3  ;;  %s518_s29 = scalar_lea.sflag [#allocation3], %s2299_s26 }
  0x26   : > { %p2008_p3 = pneg %p2308_p13 }
  0x29   : > { %s525_s27 = scalar_lea.hbm %s2782_s19, %s1798_s20  ;;  %s2011_s1 = scalar_lea.hbm %s2782_s19, 8 }
  0x2a   : > { %s527_s18 = sshll.u32 %s525_s27, 4  ;;  %s528_s18 = int_to_ptr.hbm [resolvable:$true] %s527_s18 }
  0x2b   : > { %s2004_s25 = sshra.s32 %s528_s18, 4  ;;  %s2005_s25 = int_to_ptr.hbm [resolvable:$true] %s2004_s25 }
  0x2c   : > { %s2006_s0 = scalar_lea.hbm %s2005_s25, 4  ;;  %p2012_p5 = scmp.lt.s32.totalorder %s2005_s25, %s2782_s19 }
  0x2d   : > { %p2007_p2 = scmp.ne.s32.totalorder %s2005_s25, %s2006_s0  ;;  %p2013_p8 = scmp.lt.s32.totalorder %s2011_s1, %s2006_s0 }
  0x2f   : > { %p2009_p4 = pnand %p2008_p3, %p2007_p2  ;;  %p2014_p10 = por %p2013_p8, %p2012_p5 }
  0x31   : > { %p2010_p7 = pneg %p2009_p4 }
  0x33   : > { %p2015_p9 = pnand %p2014_p10, %p2010_p7 }
  0x35   : > { %2018 = shalt.err (!%p2015_p9)
}
  0x36   : > { %1918 = dma.hbm_to_vmem [thread:$0]  (!%p2308_p13), %s528_s18, 64, %s530_s16, %s518_s29  }
  0x37   : > { %p2332_p2 = pnand %p1799_p0, %p551_p1  ;;  %s2785_s21 = sld [smem:[#allocation19_spill]] }
  0x38   : > { %s539_s1 = scalar_lea.vmem [#allocation5], %s2299_s26  ;;  %s537_s2 = scalar_lea.sflag [#allocation6], %s2299_s26 }
  0x39   : > { %s546_s22 = sshll.u32 %s539_s1, 4  ;;  %s547_s22 = int_to_ptr.vmem [resolvable:$true] %s546_s22 }
  0x3d   : > { %s542_s17 = scalar_lea.hbm %s2785_s21, %s2134_s30  ;;  %s2041_s29 = scalar_lea.hbm %s2785_s21, 2 }
  0x3e   : > { %s544_s27 = sshll.u32 %s542_s17, 4  ;;  %s545_s27 = int_to_ptr.hbm [resolvable:$true] %s544_s27 }
  0x3f   : > { %s2034_s19 = sshra.s32 %s545_s27, 4  ;;  %s2035_s19 = int_to_ptr.hbm [resolvable:$true] %s2034_s19 }
  0x40   : > { %s2036_s15 = scalar_lea.hbm %s2035_s19, 1  ;;  %p2042_p4 = scmp.lt.s32.totalorder %s2035_s19, %s2785_s21 }
  0x41   : > { %p2037_p9 = scmp.ne.s32.totalorder %s2035_s19, %s2036_s15  ;;  %p2043_p7 = scmp.lt.s32.totalorder %s2041_s29, %s2036_s15 }
  0x43   : > { %p2039_p0 = pnand %p2037_p9, %p2008_p3  ;;  %p2044_p5 = por %p2043_p7, %p2042_p4 }
  0x45   : > { %p2040_p1 = pneg %p2039_p0 }
  0x47   : > { %p2045_p8 = pnand %p2044_p5, %p2040_p1 }
  0x49   : > { %2048 = shalt.err (!%p2045_p8)
}
  0x4a   : > { %1921 = dma.hbm_to_vmem [thread:$0]  (!%p2308_p13), %s545_s27, 16, %s547_s22, %s537_s2  }
  0x4b   : > { %555 = sbr.rel (%p2332_p2) target bundleno = 2023 (0x7e7), region = 92  ;;  %s2356_s26 = sand.u32 (!%p2332_p2), 1, %s2126_s28  }
  0x4c   : > { %s2760_s17 = sshll.u32 (!%p2332_p2), %s2356_s26, 2  ;;  %s558_s1 = scalar_lea.sflag (!%p2332_p2), [#allocation3], %s2356_s26 }
  0x4d   : > { %s561_s15 = scalar_lea.vmem (!%p2332_p2), [#allocation2], %s2760_s17 }
  0x50   : > { %2109 = dma.done.wait (%p2283_p6), %s558_s1, 64  }
  0x51   : > { %2111 = vsyncadd (%p2283_p6), %s558_s1, 4294967232  ;;  %s568_s24 = scalar_lea.sflag [#allocation6], %s2356_s26  ;;  %s570_s19 = scalar_lea.vmem [#allocation5], %s2356_s26 }
  0x52   : > { %2113 = dma.done.wait (%p2283_p6), %s568_s24, 16  }
  0x53   : > { %2115 = vsyncadd (%p2283_p6), %s568_s24, 4294967280  ;;  %s2786_s22 = sld [smem:[#allocation20_spill]]  ;;  %v2384_v4 = vld [vmem:[%s561_s15] sm:$0xf]  ;;  %vm651_vm0 = vcmask 261120   ;;  %s2136_s24 = smov 112  }
  0x54   : > { %s2787_s4 = sld [smem:[#allocation22_spill]]  ;;  %s2137_s15 = smov 104   ;;  %v1896_v13 = vld [vmem:[%s2734_s6 + $0x8] sm:$0xff]  ;;  %v1895_v14 = vld [vmem:[%s2734_s6] sm:$0xff]  ;;  %v2139_v16 = vmov 1983009808  }
  0x55   : > { %s2788_s3 = sld [smem:[#allocation21_spill]]  ;;  %s2138_s2 = smov 120   ;;  %v750_v17 = vunpack.c.l.s4 %v2139_v16  ;;  %vm745_vm1 = vcmask 1047556   ;;  %v2140_v29 = vmov 1934713408   ;;  %vm1107_vm2 = vcmask 64512  }
  0x56   : > { %s2789_s5 = sld [smem:[#allocation23_spill]]  ;;  %v774_v30 = vunpack.c.l.s4 %v2140_v29  ;;  %vm1246_vm3 = vcmask 1043456   ;;  %s2141_s23 = smov 24   ;;  %vm1443_vm4 = vcmask 130048   ;;  %vm1445_vm5 = vcmask 195584  }
  0x57   : > { %v2411_v25 = vunpack.c.0.s8 %v750_v17  ;;  %s2142_s1 = smov 16   ;;  %s2791_s0 = sld [smem:[#allocation13_spill]]  ;;  %vm1687_vm13 = vcmask 257024  }
  0x58   : > { %v2420_v38 = vunpack.c.0.s8 %v774_v30  ;;  %s2792_s20 = sld [smem:[#allocation25_spill]] }
  0x59   : > { %v1892_v0 = vld [vmem:[%s2786_s22 + $0x8] sm:$0xff]  ;;  %v1891_v2 = vld [vmem:[%s2786_s22] sm:$0xff]  ;;  %s2794_s29 = sld [smem:[#allocation27_spill]] }
  0x5a   : > { %v1894_v1 = vld [vmem:[%s2787_s4 + $0x8] sm:$0xff]  ;;  %661 = vmatpush.bf16.msra.mxu0 %v1892_v0  ;;  %v1893_v3 = vld [vmem:[%s2787_s4] sm:$0xff] }
  0x5b   : > { %694 = vmatpush.bf16.msra.mxu2 %v1894_v1  ;;  %v1969_v5 = vld [vmem:[%s2788_s3] ss:$0 sm:$0xff]  ;;  %s2797_s3 = sshll.u32 %s2356_s26, 2 }
  0x5c   : > { %v1970_v8 = vld [vmem:[%s2789_s5] ss:$0 sm:$0xff] }
  0x5e   : > { %662 = vmatpush.bf16.msra.mxu0 %v1891_v2 }
  0x5f   : > { %695 = vmatpush.bf16.msra.mxu2 %v1893_v3  ;;  %s2795_s25 = smov %s2794_s29 }
  0x61   : > { %1810 = vmatmul.msk.bf16.vlgmr.msra.gmra.mxu0 %vm651_vm0, %v2384_v4 }
  0x62   : > { %1819 = vmatmul.msk.bf16.vlgmr.msra.gmra.mxu2 %vm651_vm0, %v2384_v4 }
  0x63   : > { %727 = vmatpush.bf16.msrb.mxu2 %v1896_v13 }
  0x67   : > { %728 = vmatpush.bf16.msrb.mxu2 %v1895_v14 }
  0x72   : > { %1828 = vmatmul.msk.bf16.vlgmr.msrb.gmra.mxu2 %vm651_vm0, %v2384_v4 }
  0xde   : > { %v664_v6 = vpop.f32.mrf.mxu0 }
  0xdf   : > { %v665_v7 = vadd.f32 %v1969_v5, %v664_v6 }
  0xe1   : > { %738 = vrot.lane.b32.xlu2 %v665_v7, %s2136_s24  ;;  %v747_v23 = vrot.slane %v665_v7, 4 }
  0xe5   : > { %v697_v9 = vpop.f32.mrf.mxu2 }
  0xe6   : > { %v698_v10 = vadd.f32 %v1970_v8, %v697_v9  ;;  %v666_v11 = vpop.f32.mrf.mxu0 }
  0xe8   : > { %866 = vrot.lane.b32.xlu1 %v698_v10, %s2137_s15  ;;  %860 = vrot.lane.b32.xlu0 %v698_v10, %s2138_s2  ;;  %v871_v36 = vrot.slane %v698_v10, 4 }
  0xe9   : > { %741 = vrot.lane.b32.xlu2 %v665_v7, %s2137_s15 }
  0xed   : > { %v699_v12 = vpop.f32.mrf.mxu2 }
  0xf0   : > { %863 = vrot.lane.b32.xlu0 %v698_v10, %s2136_s24  ;;  %735 = vrot.lane.b32.xlu1 %v665_v7, %s2138_s2 }
 0x13b   : > { %v739_v15 = vpop.permute.xlu2 %738 }
 0x13c   : > { %v744_v18 = vrot.slane %v739_v15, 4  ;;  %v748_v31 = vsel %vm745_vm1, %v739_v15, %v747_v23 }
 0x13d   : > { %v756_v37 = vperm.slane %v748_v31, %v2411_v25 }
 0x13e   : > { %v746_v26 = vsel %vm745_vm1, %v744_v18, %v665_v7 }
 0x13f   : > { %v752_v33 = vperm.slane %v746_v26, %v2411_v25  ;;  %v783_v56 = vrot.slane %v756_v37, 4 }
 0x141   : > { %v771_v48 = vrot.slane %v752_v33, 4 }
 0x143   : > { %v742_v28 = vpop.permute.xlu2 %741 }
 0x144   : > { %v757_v35 = vrot.slane %v742_v28, 4 }
 0x15a   : > { %v867_v19 = vpop.permute.xlu1 %866  ;;  %v861_v20 = vpop.permute.xlu0 %860 }
 0x15b   : > { %v881_v21 = vrot.slane %v867_v19, 4  ;;  %v883_v22 = vrot.slane %v861_v20, 4 }
 0x15d   : > { %v884_v24 = vsel %vm745_vm1, %v867_v19, %v883_v22  ;;  %v882_v27 = vsel %vm745_vm1, %v881_v21, %v861_v20 }
 0x15e   : > { %v892_v32 = vperm.slane %v884_v24, %v2411_v25  ;;  %v888_v34 = vperm.slane %v882_v27, %v2411_v25 }
 0x160   : > { %v905_v45 = vrot.slane %v892_v32, 4  ;;  %v893_v49 = vrot.slane %v888_v34, 4 }
 0x162   : > { %v864_v39 = vpop.permute.xlu0 %863  ;;  %v736_v40 = vpop.permute.xlu1 %735 }
 0x163   : > { %v869_v41 = vrot.slane %v864_v39, 4  ;;  %v872_v42 = vsel %vm745_vm1, %v864_v39, %v871_v36  ;;  %v758_v43 = vsel %vm745_vm1, %v757_v35, %v736_v40  ;;  %v759_v44 = vrot.slane %v736_v40, 4 }
 0x164   : > { %v880_v46 = vperm.slane %v872_v42, %v2411_v25  ;;  %v764_v47 = vperm.slane %v758_v43, %v2411_v25 }
 0x165   : > { %v870_v50 = vsel %vm745_vm1, %v869_v41, %v698_v10  ;;  %v760_v51 = vsel %vm745_vm1, %v742_v28, %v759_v44 }
 0x166   : > { %v876_v52 = vperm.slane %v870_v50, %v2411_v25  ;;  %v906_v53 = vsel %vm745_vm1, %v905_v45, %v880_v46  ;;  %v907_v54 = vrot.slane %v880_v46, 4  ;;  %v768_v55 = vperm.slane %v760_v51, %v2411_v25 }
 0x167   : > { %v912_v57 = vperm.slane %v906_v53, %v2420_v38  ;;  %v769_v58 = vrot.slane %v764_v47, 4  ;;  %v772_v59 = vsel %vm745_vm1, %v764_v47, %v771_v48 }
 0x168   : > { %v894_v60 = vsel %vm745_vm1, %v893_v49, %v876_v52  ;;  %v895_v61 = vrot.slane %v876_v52, 4  ;;  %v908_v62 = vsel %vm745_vm1, %v892_v32, %v907_v54  ;;  %v780_v63 = vperm.slane %v772_v59, %v2420_v38 }
 0x169   : > { %v900_v0 = vperm.slane %v894_v60, %v2420_v38  ;;  %v916_v1 = vperm.slane %v908_v62, %v2420_v38  ;;  %v921_v2 = vrot.slane %v912_v57, 4  ;;  %v770_v3 = vsel %vm745_vm1, %v769_v58, %v752_v33 }
 0x16a   : > { %v896_v5 = vsel %vm745_vm1, %v888_v34, %v895_v61  ;;  %v776_v6 = vperm.slane %v770_v3, %v2420_v38  ;;  %v781_v7 = vrot.slane %v768_v55, 4  ;;  %v784_v8 = vsel %vm745_vm1, %v768_v55, %v783_v56 }
 0x16b   : > { %v904_v9 = vperm.slane %v896_v5, %v2420_v38  ;;  %v917_v10 = vrot.slane %v900_v0, 4  ;;  %v922_v11 = vsel %vm745_vm1, 0.0, %v921_v2  ;;  %v923_v12 = vrot.slane %v916_v1, 4 }
 0x16c   : > { %v782_v13 = vsel %vm745_vm1, %v781_v7, %v756_v37  ;;  %v792_v14 = vperm.slane %v784_v8, %v2420_v38  ;;  %v793_v15 = vrot.slane %v776_v6, 4  ;;  %v795_v16 = vrot.slane %v780_v63, 4 }
 0x16d   : > { %v919_v17 = vrot.slane %v904_v9, 4  ;;  %v924_v18 = vsel %vm745_vm1, 0.0, %v923_v12  ;;  %v936_v19 = vsel %vm745_vm1, %v923_v12, %v912_v57  ;;  %v788_v20 = vperm.slane %v782_v13, %v2420_v38 }
 0x16e   : > { %v940_v21 = vperm.slane %v936_v19, %v2411_v25  ;;  %v941_v22 = vrot.slane %v924_v18, 4  ;;  %v794_v23 = vsel %vm745_vm1, 0.0, %v793_v15  ;;  %v796_v24 = vsel %vm745_vm1, 0.0, %v795_v16 }
 0x16f   : > { %v920_v26 = vsel %vm745_vm1, 0.0, %v919_v17  ;;  %v797_v27 = vrot.slane %v788_v20, 4  ;;  %v799_v28 = vrot.slane %v792_v14, 4  ;;  %v801_v29 = vsel %vm745_vm1, %v795_v16, %v776_v6 }
 0x170   : > { %v942_v30 = vsel %vm745_vm1, %v941_v22, %v922_v11  ;;  %v805_v31 = vperm.slane %v801_v29, %v2411_v25  ;;  %v806_v32 = vrot.slane %v796_v24, 4  ;;  %v918_v33 = vsel %vm745_vm1, 0.0, %v917_v10 }
 0x171   : > { %v798_v34 = vsel %vm745_vm1, 0.0, %v797_v27  ;;  %v800_v35 = vsel %vm745_vm1, 0.0, %v799_v28  ;;  %v812_v36 = vsel %vm745_vm1, %v799_v28, %v788_v20  ;;  %v925_v37 = vsel %vm745_vm1, %v919_v17, %v900_v0 }
 0x172   : > { %v817_v39 = vrot.slane %v800_v35, 4  ;;  %v929_v40 = vperm.slane %v925_v37, %v2411_v25  ;;  %v930_v41 = vrot.slane %v920_v26, 4  ;;  %v946_v42 = vperm.slane %v942_v30, %v2411_v25 }
 0x173   : > { %v961_v43 = vrot.slane %v940_v21, 4  ;;  %v807_v44 = vsel %vm745_vm1, %v806_v32, %v794_v23  ;;  %v816_v45 = vperm.slane %v812_v36, %v2411_v25  ;;  %v825_v46 = vrot.slane %v805_v31, 4 }
 0x174   : > { %v931_v47 = vsel %vm745_vm1, %v930_v41, %v918_v33  ;;  %v949_v48 = vrot.slane %v929_v40, 4  ;;  %v959_v49 = vrot.slane %v946_v42, 4  ;;  %v811_v50 = vperm.slane %v807_v44, %v2411_v25  ;;  %v730_v41 = vpop.f32.mrf.mxu2 }
 0x175   : > { %v935_v51 = vperm.slane %v931_v47, %v2411_v25  ;;  %v962_v52 = vsel %vm745_vm1, %v946_v42, %v961_v43  ;;  %v818_v53 = vsel %vm745_vm1, %v817_v39, %v798_v34  ;;  %v837_v54 = vrot.slane %v816_v45, 4  ;;  %v1972_v43 = vld [vmem:[%s570_s19] ss:$0 sm:$0xff]  ;;  %s2790_s19 = sld [smem:[#allocation24_spill]] }
 0x176   : > { %v970_v55 = vperm.slane %v962_v52, %v2420_v38  ;;  %v960_v56 = vsel %vm745_vm1, %v959_v49, %v940_v21  ;;  %v822_v57 = vperm.slane %v818_v53, %v2411_v25  ;;  %v826_v58 = vsel %vm745_vm1, %v811_v50, %v825_v46 }
 0x177   : > { %v950_v59 = vsel %vm745_vm1, %v935_v51, %v949_v48  ;;  %v947_v60 = vrot.slane %v935_v51, 4  ;;  %v966_v61 = vperm.slane %v960_v56, %v2420_v38  ;;  %v823_v1 = vrot.slane %v811_v50, 4 }
 0x178   : > { %v958_v62 = vperm.slane %v950_v59, %v2420_v38  ;;  %v975_v63 = vrot.slane %v970_v55, 4  ;;  %v838_v0 = vsel %vm745_vm1, %v822_v57, %v837_v54  ;;  %v834_v5 = vperm.slane %v826_v58, %v2420_v38 }
 0x179   : > { %v948_v2 = vsel %vm745_vm1, %v947_v60, %v929_v40  ;;  %v971_v3 = vrot.slane %v966_v61, 4  ;;  %v846_v6 = vperm.slane %v838_v0, %v2420_v38  ;;  %v824_v10 = vsel %vm745_vm1, %v823_v1, %v805_v31  ;;  %v1971_v0 = vld [vmem:[%s2735_s7] ss:$0 sm:$0xff] }
 0x17a   : > { %v976_v7 = vsel %vm745_vm1, %v975_v63, %v958_v62  ;;  %v977_v8 = vrot.slane %v958_v62, 4  ;;  %v954_v9 = vperm.slane %v948_v2, %v2420_v38  ;;  %v835_v13 = vrot.slane %v822_v57, 4 }
 0x17b   : > { %v981_v11 = vpack.c.bf16 %v976_v7, %v976_v7  ;;  %v851_v12 = vrot.slane %v846_v6, 4  ;;  %v830_v17 = vperm.slane %v824_v10, %v2420_v38  ;;  %v853_v22 = vrot.slane %v834_v5, 4 }
 0x17c   : > { %v972_v14 = vsel %vm745_vm1, %v971_v3, %v954_v9  ;;  %v978_v15 = vsel %vm745_vm1, %v970_v55, %v977_v8  ;;  %v973_v16 = vrot.slane %v954_v9, 4  ;;  %v836_v23 = vsel %vm745_vm1, %v835_v13, %v816_v45  ;;  %v732_v42 = vpop.f32.mrf.mxu2 }
 0x17d   : > { %v1150_v18 = vsel %vm1107_vm2, %v981_v11, 0  ;;  %v979_v19 = vpack.c.bf16 %v972_v14, %v972_v14  ;;  %v982_v20 = vpack.c.bf16 %v978_v15, %v978_v15  ;;  %v842_v28 = vperm.slane %v836_v23, %v2420_v38 }
 0x17e   : > { %1159 = vmatpush.bf16.xpose.msra.mxu1 %v1150_v18  ;;  %v974_v21 = vsel %vm745_vm1, %v966_v61, %v973_v16  ;;  %v852_v29 = vsel %vm745_vm1, %v851_v12, %v834_v5  ;;  %v849_v30 = vrot.slane %v830_v17, 4  ;;  %v854_v33 = vsel %vm745_vm1, %v846_v6, %v853_v22 }
 0x17f   : > { %v1112_v24 = vsel %vm1107_vm2, %v979_v19, 0  ;;  %v1169_v26 = vsel %vm1107_vm2, %v982_v20, 0  ;;  %v980_v27 = vpack.c.bf16 %v974_v21, %v974_v21  ;;  %v847_v32 = vrot.slane %v842_v28, 4 }
 0x180   : > { %1121 = vmatpush.bf16.xpose.msra.mxu3 %v1112_v24  ;;  %1178 = vmatpush.bf16.xpose.msra.mxu2 %v1169_v26  ;;  %v857_v34 = vpack.c.bf16 %v852_v29, %v852_v29  ;;  %v850_v36 = vsel %vm745_vm1, %v842_v28, %v849_v30  ;;  %v858_v39 = vpack.c.bf16 %v854_v33, %v854_v33 }
 0x181   : > { %v1131_v31 = vsel %vm1107_vm2, %v980_v27, 0  ;;  %v848_v35 = vsel %vm745_vm1, %v847_v32, %v830_v17  ;;  %v856_v40 = vpack.c.bf16 %v850_v36, %v850_v36  ;;  %v731_v1 = vadd.f32 %v1971_v0, %v730_v41 }
 0x182   : > { %1140 = vmatpush.bf16.xpose.msrb.mxu0 %v1131_v31  ;;  %v855_v37 = vpack.c.bf16 %v848_v35, %v848_v35 }
 0x183   : > { %v995_v31 = vrot.slane %v731_v1, 4 }
 0x185   : > { %1831 = vmatmul.msk.bf16.vlgmr.msra.gmra.mxu1 %vm1107_vm2, %v857_v34 }
 0x187   : > { %1829 = vmatmul.msk.bf16.vlgmr.msra.gmra.mxu3 %vm1107_vm2, %v855_v37  ;;  %1832 = vmatmul.msk.bf16.vlgmr.msra.gmra.mxu2 %vm1107_vm2, %v858_v39 }
 0x189   : > { %1830 = vmatmul.msk.bf16.vlgmr.msrb.gmra.mxu0 %vm1107_vm2, %v856_v40 }
 0x202   : > { %v1161_v44 = vpop.f32.mrf.mxu1 }
 0x203   : > { %v1186_v45 = vmul.f32 0.35355338, %v1161_v44 }
 0x205   : > { %v1193_v46 = vadd.f32 %v1972_v43, %v1186_v45 }
 0x206   : > { %v1142_v47 = vpop.f32.mrf.mxu0 }
 0x207   : > { %v1185_v48 = vmul.f32 0.35355338, %v1142_v47  ;;  %v1201_v49 = vsel %vm1107_vm2, %v1193_v46, -inf }
 0x208   : > { %1202 = vmax.xlane.f32.xlu2 %v1201_v49 }
 0x209   : > { %v1192_v54 = vadd.f32 %v1972_v43, %v1185_v48 }
 0x20a   : > { %v1123_v50 = vpop.f32.mrf.mxu3  ;;  %v1163_v51 = vpop.f32.mrf.mxu1 }
 0x20b   : > { %v1184_v52 = vmul.f32 0.35355338, %v1123_v50  ;;  %v1180_v53 = vpop.f32.mrf.mxu2  ;;  %v1198_v59 = vsel %vm1107_vm2, %v1192_v54, -inf }
 0x20c   : > { %v1187_v55 = vmul.f32 0.35355338, %v1180_v53 }
 0x20d   : > { %v1191_v56 = vadd.f32 %v1972_v43, %v1184_v52 }
 0x20e   : > { %v1144_v57 = vpop.f32.mrf.mxu0  ;;  %v1194_v58 = vadd.f32 %v1972_v43, %v1187_v55 }
 0x20f   : > { %v1195_v60 = vsel %vm1107_vm2, %v1191_v56, -inf }
 0x210   : > { %v1204_v61 = vsel %vm1107_vm2, %v1194_v58, -inf  ;;  %1199 = vmax.xlane.f32.xlu2 %v1198_v59  ;;  %1196 = vmax.xlane.f32.xlu0 %v1195_v60 }
 0x211   : > { %1205 = vmax.xlane.f32.xlu1 %v1204_v61 }
 0x212   : > { %v1125_v62 = vpop.f32.mrf.mxu3 }
 0x213   : > { %v1182_v63 = vpop.f32.mrf.mxu2 }
 0x224   : > { %984 = vrot.lane.b32.xlu0 %v731_v1, %s2138_s2  ;;  %s2793_s2 = sld [smem:[#allocation26_spill]] }
 0x228   : > { %990 = vrot.lane.b32.xlu2 %v731_v1, %s2137_s15 }
 0x22a   : > { %987 = vrot.lane.b32.xlu1 %v731_v1, %s2136_s24  ;;  %s2143_s24 = smov 8  }
 0x27b   : > { %v1203_v2 = vpop.xlane.xlu2 %1202 }
 0x27c   : > { %v1209_v3 = vsub.f32 %v1193_v46, %v1203_v2 }
 0x27e   : > { %v1215_v5 = vmul.f32 1.442695, %v1209_v3 }
 0x280   : > { %1980 = vpow2.f32 %v1215_v5 }
 0x283   : > { %v1197_v6 = vpop.xlane.xlu0 %1196  ;;  %v1200_v10 = vpop.xlane.xlu2 %1199 }
 0x284   : > { %v1206_v7 = vpop.xlane.xlu1 %1205  ;;  %v1207_v8 = vsub.f32 %v1191_v56, %v1197_v6  ;;  %v1208_v15 = vsub.f32 %v1192_v54, %v1200_v10 }
 0x285   : > { %v1210_v9 = vsub.f32 %v1194_v58, %v1206_v7 }
 0x286   : > { %v2514_v11 = vpop.eup %1980  ;;  %v1211_v12 = vmul.f32 1.442695, %v1207_v8  ;;  %v1213_v16 = vmul.f32 1.442695, %v1208_v15 }
 0x287   : > { %v1217_v13 = vmul.f32 1.442695, %v1210_v9  ;;  %v1225_v14 = vsel %vm1107_vm2, %v2514_v11, 0.0 }
 0x288   : > { %1226 = vadd.xlane.f32.xlu2 %v1225_v14 }
 0x289   : > { %1982 = vpow2.f32 %v1217_v13 }
 0x28a   : > { %1984 = vpow2.f32 %v1211_v12 }
 0x28b   : > { %1986 = vpow2.f32 %v1213_v16  ;;  %v991_v21 = vpop.permute.xlu2 %990 }
 0x28c   : > { %v1005_v24 = vrot.slane %v991_v21, 4 }
 0x28f   : > { %v2518_v17 = vpop.eup %1982 }
 0x290   : > { %v2520_v18 = vpop.eup %1984  ;;  %v1228_v19 = vsel %vm1107_vm2, %v2518_v17, 0.0 }
 0x291   : > { %1229 = vadd.xlane.f32.xlu1 %v1228_v19  ;;  %v1219_v20 = vsel %vm1107_vm2, %v2520_v18, 0.0  ;;  %v2526_v22 = vpop.eup %1986 }
 0x292   : > { %1220 = vadd.xlane.f32.xlu0 %v1219_v20  ;;  %v1222_v29 = vsel %vm1107_vm2, %v2526_v22, 0.0 }
 0x296   : > { %v985_v23 = vpop.permute.xlu0 %984 }
 0x297   : > { %v1007_v26 = vrot.slane %v985_v23, 4  ;;  %v1006_v27 = vsel %vm745_vm1, %v1005_v24, %v985_v23 }
 0x298   : > { %v1012_v32 = vperm.slane %v1006_v27, %v2411_v25 }
 0x299   : > { %v1008_v28 = vsel %vm745_vm1, %v991_v21, %v1007_v26 }
 0x29a   : > { %v1016_v30 = vperm.slane %v1008_v28, %v2411_v25  ;;  %1223 = vadd.xlane.f32.xlu0 %v1222_v29  ;;  %v1017_v40 = vrot.slane %v1012_v32, 4 }
 0x29c   : > { %v1029_v33 = vrot.slane %v1016_v30, 4  ;;  %v988_v34 = vpop.permute.xlu1 %987 }
 0x29d   : > { %v993_v35 = vrot.slane %v988_v34, 4  ;;  %v996_v36 = vsel %vm745_vm1, %v988_v34, %v995_v31 }
 0x29e   : > { %v1004_v37 = vperm.slane %v996_v36, %v2411_v25 }
 0x29f   : > { %v994_v39 = vsel %vm745_vm1, %v993_v35, %v731_v1 }
 0x2a0   : > { %v1000_v41 = vperm.slane %v994_v39, %v2411_v25  ;;  %v1030_v42 = vsel %vm745_vm1, %v1029_v33, %v1004_v37  ;;  %v1031_v43 = vrot.slane %v1004_v37, 4 }
 0x2a1   : > { %v1036_v44 = vperm.slane %v1030_v42, %v2420_v38 }
 0x2a2   : > { %v1018_v45 = vsel %vm745_vm1, %v1017_v40, %v1000_v41  ;;  %v1019_v46 = vrot.slane %v1000_v41, 4  ;;  %v1032_v47 = vsel %vm745_vm1, %v1016_v30, %v1031_v43 }
 0x2a3   : > { %v1024_v48 = vperm.slane %v1018_v45, %v2420_v38  ;;  %v1040_v49 = vperm.slane %v1032_v47, %v2420_v38  ;;  %v1045_v52 = vrot.slane %v1036_v44, 4 }
 0x2a4   : > { %v1020_v50 = vsel %vm745_vm1, %v1012_v32, %v1019_v46 }
 0x2a5   : > { %v1028_v51 = vperm.slane %v1020_v50, %v2420_v38  ;;  %v1047_v53 = vrot.slane %v1040_v49, 4  ;;  %v1041_v54 = vrot.slane %v1024_v48, 4  ;;  %v1046_v61 = vsel %vm745_vm1, 0.0, %v1045_v52 }
 0x2a7   : > { %v1043_v55 = vrot.slane %v1028_v51, 4  ;;  %v1048_v56 = vsel %vm745_vm1, 0.0, %v1047_v53  ;;  %v1060_v57 = vsel %vm745_vm1, %v1047_v53, %v1036_v44  ;;  %v1042_v3 = vsel %vm745_vm1, 0.0, %v1041_v54 }
 0x2a8   : > { %v1064_v58 = vperm.slane %v1060_v57, %v2411_v25  ;;  %v1065_v59 = vrot.slane %v1048_v56, 4 }
 0x2a9   : > { %v1044_v60 = vsel %vm745_vm1, 0.0, %v1043_v55  ;;  %v1049_v62 = vsel %vm745_vm1, %v1043_v55, %v1024_v48 }
 0x2aa   : > { %v1054_v63 = vrot.slane %v1044_v60, 4  ;;  %v1066_v0 = vsel %vm745_vm1, %v1065_v59, %v1046_v61  ;;  %v1053_v1 = vperm.slane %v1049_v62, %v2411_v25  ;;  %v1085_v2 = vrot.slane %v1064_v58, 4 }
 0x2ab   : > { %v1070_v5 = vperm.slane %v1066_v0, %v2411_v25 }
 0x2ac   : > { %v1055_v6 = vsel %vm745_vm1, %v1054_v63, %v1042_v3  ;;  %v1073_v7 = vrot.slane %v1053_v1, 4 }
 0x2ad   : > { %v1059_v8 = vperm.slane %v1055_v6, %v2411_v25  ;;  %v1086_v9 = vsel %vm745_vm1, %v1070_v5, %v1085_v2  ;;  %v1083_v10 = vrot.slane %v1070_v5, 4 }
 0x2ae   : > { %v1094_v12 = vperm.slane %v1086_v9, %v2420_v38 }
 0x2af   : > { %v1074_v13 = vsel %vm745_vm1, %v1059_v8, %v1073_v7  ;;  %v1071_v14 = vrot.slane %v1059_v8, 4  ;;  %v1084_v15 = vsel %vm745_vm1, %v1083_v10, %v1064_v58 }
 0x2b0   : > { %v1082_v16 = vperm.slane %v1074_v13, %v2420_v38  ;;  %v1099_v19 = vrot.slane %v1094_v12, 4  ;;  %v1090_v20 = vperm.slane %v1084_v15, %v2420_v38 }
 0x2b1   : > { %v1072_v21 = vsel %vm745_vm1, %v1071_v14, %v1053_v1 }
 0x2b2   : > { %v1100_v23 = vsel %vm745_vm1, %v1099_v19, %v1082_v16  ;;  %v1101_v24 = vrot.slane %v1082_v16, 4  ;;  %v1078_v26 = vperm.slane %v1072_v21, %v2420_v38  ;;  %v1095_v27 = vrot.slane %v1090_v20, 4 }
 0x2b3   : > { %v1105_v28 = vpack.c.bf16 %v1100_v23, %v1100_v23 }
 0x2b4   : > { %v1096_v29 = vsel %vm745_vm1, %v1095_v27, %v1078_v26  ;;  %v1097_v30 = vrot.slane %v1078_v26, 4  ;;  %v1102_v31 = vsel %vm745_vm1, %v1094_v12, %v1101_v24 }
 0x2b5   : > { %v1286_v32 = vsel %vm1246_vm3, %v1105_v28, 0  ;;  %v1103_v33 = vpack.c.bf16 %v1096_v29, %v1096_v29  ;;  %v1106_v34 = vpack.c.bf16 %v1102_v31, %v1102_v31 }
 0x2b6   : > { %1295 = vmatpush.bf16.msrb.mxu1 %v1286_v32  ;;  %v1098_v35 = vsel %vm745_vm1, %v1090_v20, %v1097_v30 }
 0x2b7   : > { %v1248_v36 = vsel %vm1246_vm3, %v1103_v33, 0  ;;  %v1305_v37 = vsel %vm1246_vm3, %v1106_v34, 0  ;;  %v1104_v39 = vpack.c.bf16 %v1098_v35, %v1098_v35 }
 0x2b8   : > { %1257 = vmatpush.bf16.msrb.mxu3 %v1248_v36  ;;  %1314 = vmatpush.bf16.msrb.mxu2 %v1305_v37 }
 0x2b9   : > { %v1267_v40 = vsel %vm1246_vm3, %v1104_v39, 0 }
 0x2ba   : > { %1276 = vmatpush.bf16.msra.mxu0 %v1267_v40 }
 0x2fb   : > { %v1227_v41 = vpop.xlane.xlu2 %1226 }
 0x2fc   : > { %1988 = vrcp.f32 %v1227_v41 }
 0x302   : > { %v1989_v42 = vpop.eup %1988 }
 0x303   : > { %v1237_v43 = vmul.f32 %v1989_v42, %v2514_v11 }
 0x304   : > { %v1230_v44 = vpop.xlane.xlu1 %1229 }
 0x305   : > { %1990 = vrcp.f32 %v1230_v44  ;;  %v1221_v45 = vpop.xlane.xlu0 %1220  ;;  %v1241_v46 = vpack.c.bf16 %v1237_v43, %v1237_v43 }
 0x306   : > { %1992 = vrcp.f32 %v1221_v45 }
 0x307   : > { %1835 = vmatmul.msk.bf16.vlgmr.msrb.gmra.mxu1 %vm1107_vm2, %v1241_v46 }
 0x30b   : > { %v1991_v47 = vpop.eup %1990 }
 0x30c   : > { %v1993_v48 = vpop.eup %1992  ;;  %v1238_v49 = vmul.f32 %v1991_v47, %v2518_v17 }
 0x30d   : > { %v1235_v50 = vmul.f32 %v1993_v48, %v2520_v18  ;;  %v1224_v51 = vpop.xlane.xlu0 %1223 }
 0x30e   : > { %v1242_v52 = vpack.c.bf16 %v1238_v49, %v1238_v49  ;;  %1994 = vrcp.f32 %v1224_v51 }
 0x30f   : > { %v1239_v53 = vpack.c.bf16 %v1235_v50, %v1235_v50 }
 0x310   : > { %1836 = vmatmul.msk.bf16.vlgmr.msrb.gmra.mxu2 %vm1107_vm2, %v1242_v52 }
 0x311   : > { %1833 = vmatmul.msk.bf16.vlgmr.msrb.gmra.mxu3 %vm1107_vm2, %v1239_v53 }
 0x314   : > { %v1995_v11 = vpop.eup %1994 }
 0x315   : > { %v1236_v54 = vmul.f32 %v1995_v11, %v2526_v22 }
 0x317   : > { %v1240_v55 = vpack.c.bf16 %v1236_v54, %v1236_v54 }
 0x319   : > { %1834 = vmatmul.msk.bf16.vlgmr.msra.gmra.mxu0 %vm1107_vm2, %v1240_v55 }
 0x384   : > { %v1297_v56 = vpop.f32.mrf.mxu1 }
 0x385   : > { %v1320_v58 = vrot.slane %v1297_v56, 4 }
 0x38c   : > { %v1299_v57 = vpop.f32.mrf.mxu1 }
 0x393   : > { %v1316_v17 = vpop.f32.mrf.mxu2 }
 0x394   : > { %v1259_v59 = vpop.f32.mrf.mxu3  ;;  %v1332_v18 = vrot.slane %v1316_v17, 4 }
 0x395   : > { %v1321_v60 = vsel %vm745_vm1, %v1320_v58, %v1259_v59  ;;  %v1322_v61 = vrot.slane %v1259_v59, 4 }
 0x396   : > { %v1327_v62 = vperm.slane %v1321_v60, %v2411_v25  ;;  %v1278_v63 = vpop.f32.mrf.mxu0 }
 0x397   : > { %v1323_v0 = vsel %vm745_vm1, %v1297_v56, %v1322_v61  ;;  %v1333_v1 = vsel %vm745_vm1, %v1332_v18, %v1278_v63  ;;  %v1334_v22 = vrot.slane %v1278_v63, 4 }
 0x398   : > { %v1331_v2 = vperm.slane %v1323_v0, %v2411_v25  ;;  %v1346_v3 = vrot.slane %v1327_v62, 4  ;;  %v1339_v5 = vperm.slane %v1333_v1, %v2411_v25 }
 0x399   : > { %v1335_v6 = vsel %vm745_vm1, %v1316_v17, %v1334_v22 }
 0x39a   : > { %v1358_v7 = vrot.slane %v1331_v2, 4  ;;  %v1343_v8 = vperm.slane %v1335_v6, %v2411_v25  ;;  %v1344_v9 = vrot.slane %v1339_v5, 4  ;;  %v1347_v10 = vsel %vm745_vm1, %v1339_v5, %v1346_v3  ;;  %v1973_v6 = vld [vmem:[%s2737_s9] ss:$0 sm:$0xff] }
 0x39b   : > { %v1355_v12 = vperm.slane %v1347_v10, %v2420_v38  ;;  %v1318_v13 = vpop.f32.mrf.mxu2 }
 0x39c   : > { %v1345_v14 = vsel %vm745_vm1, %v1344_v9, %v1327_v62  ;;  %v1356_v15 = vrot.slane %v1343_v8, 4  ;;  %v1359_v16 = vsel %vm745_vm1, %v1343_v8, %v1358_v7  ;;  %v1261_v19 = vpop.f32.mrf.mxu3  ;;  %v1898_v62 = vld [vmem:[%s2736_s8 + $0x8] sm:$0xff]  ;;  %v1484_v7 = vunpack.c.l.bf16 %v2384_v4 }
 0x39d   : > { %v1351_v20 = vperm.slane %v1345_v14, %v2420_v38  ;;  %v1367_v21 = vperm.slane %v1359_v16, %v2420_v38  ;;  %v1370_v23 = vrot.slane %v1355_v12, 4  ;;  %1477 = vmatpush.bf16.msra.mxu3 %v1898_v62  ;;  %v2144_v14 = vmov 32.0  }
 0x39e   : > { %v1357_v24 = vsel %vm745_vm1, %v1356_v15, %v1331_v2  ;;  %v1280_v26 = vpop.f32.mrf.mxu0  ;;  %1996 = vrcp.f32 %v2144_v14 }
 0x39f   : > { %v1363_v27 = vperm.slane %v1357_v24, %v2420_v38  ;;  %v1368_v28 = vrot.slane %v1351_v20, 4  ;;  %v1371_v29 = vsel %vm745_vm1, 0.0, %v1370_v23  ;;  %v1374_v30 = vrot.slane %v1367_v21, 4 }
 0x3a0   : > { %v1376_v31 = vsel %vm745_vm1, %v1370_v23, %v1351_v20  ;;  %v1381_v32 = vrot.slane %v1371_v29, 4  ;;  %v1900_v29 = vld [vmem:[%s2740_s12 + $0x8] sm:$0xff] }
 0x3a1   : > { %v1369_v33 = vsel %vm745_vm1, 0.0, %v1368_v28  ;;  %v1372_v34 = vrot.slane %v1363_v27, 4  ;;  %v1375_v35 = vsel %vm745_vm1, 0.0, %v1374_v30  ;;  %v1380_v36 = vperm.slane %v1376_v31, %v2411_v25  ;;  %1555 = vmatpush.bf16.msrb.mxu0 %v1900_v29  ;;  %v1908_v31 = vld [vmem:[%s2742_s14 + $0x38] sm:$0xff] }
 0x3a2   : > { %v1392_v37 = vrot.slane %v1375_v35, 4  ;;  %v1382_v39 = vsel %vm745_vm1, %v1381_v32, %v1369_v33  ;;  %v1387_v40 = vsel %vm745_vm1, %v1374_v30, %v1363_v27  ;;  %v1899_v30 = vld [vmem:[%s2740_s12] sm:$0xff]  ;;  %1640 = vmatpush.bf16.msra.mxu1 %v1908_v31 }
 0x3a3   : > { %v1373_v41 = vsel %vm745_vm1, 0.0, %v1372_v34  ;;  %v1386_v42 = vperm.slane %v1382_v39, %v2411_v25  ;;  %v1391_v43 = vperm.slane %v1387_v40, %v2411_v25  ;;  %v1400_v44 = vrot.slane %v1380_v36, 4 }
 0x3a4   : > { %v1393_v45 = vsel %vm745_vm1, %v1392_v37, %v1373_v41  ;;  %v1997_v15 = vpop.eup %1996 }
 0x3a5   : > { %v1397_v46 = vperm.slane %v1393_v45, %v2411_v25  ;;  %v1401_v47 = vsel %vm745_vm1, %v1386_v42, %v1400_v44  ;;  %v1412_v48 = vrot.slane %v1391_v43, 4  ;;  %v1398_v49 = vrot.slane %v1386_v42, 4  ;;  %1556 = vmatpush.bf16.msrb.mxu0 %v1899_v30  ;;  %v1974_v42 = vld [vmem:[%s2738_s10] ss:$0 sm:$0xff] }
 0x3a6   : > { %v1409_v50 = vperm.slane %v1401_v47, %v2420_v38  ;;  %v1490_v16 = vmul.f32 32.0, %v1997_v15  ;;  %vm1494_vm6 = vweird.f32 %v1997_v15  ;;  %v1975_v44 = vld [vmem:[%s2739_s11] ss:$0 sm:$0xff] }
 0x3a7   : > { %v1413_v51 = vsel %vm745_vm1, %v1397_v46, %v1412_v48  ;;  %v1399_v52 = vsel %vm745_vm1, %v1398_v49, %v1380_v36  ;;  %v1410_v53 = vrot.slane %v1397_v46, 4  ;;  %v1907_v49 = vld [vmem:[%s2742_s14 + $0x30] sm:$0xff] }
 0x3a8   : > { %v1421_v11 = vperm.slane %v1413_v51, %v2420_v38  ;;  %v1428_v54 = vrot.slane %v1409_v50, 4  ;;  %v1405_v55 = vperm.slane %v1399_v52, %v2420_v38  ;;  %v1491_v19 = vsub.f32 1.0, %v1490_v16  ;;  %1641 = vmatpush.bf16.msra.mxu1 %v1907_v49  ;;  %v1905_v51 = vld [vmem:[%s2742_s14 + $0x20] sm:$0xff]  ;;  %v1904_v52 = vld [vmem:[%s2742_s14 + $0x18] sm:$0xff] }
 0x3a9   : > { %v1411_v56 = vsel %vm745_vm1, %v1410_v53, %v1391_v43  ;;  %v1903_v53 = vld [vmem:[%s2742_s14 + $0x10] sm:$0xff] }
 0x3aa   : > { %v1429_v25 = vsel %vm745_vm1, %v1421_v11, %v1428_v54  ;;  %v1426_v57 = vrot.slane %v1421_v11, 4  ;;  %v1417_v58 = vperm.slane %v1411_v56, %v2420_v38  ;;  %v1424_v17 = vrot.slane %v1405_v55, 4  ;;  %v1897_v38 = vld [vmem:[%s2736_s8] sm:$0xff]  ;;  %v1902_v11 = vld [vmem:[%s2742_s14 + $0x8] sm:$0xff] }
 0x3ab   : > { %1439 = vrot.lane.b32.xlu2 %v1429_v25, %s2141_s23  ;;  %1478 = vmatpush.bf16.msra.mxu3 %v1897_v38  ;;  %v1492_v20 = vmul.f32 %v1997_v15, %v1491_v19  ;;  %v1901_v54 = vld [vmem:[%s2742_s14] sm:$0xff]  ;;  %s1888_s23 = sshll.u32 %s2791_s0, 2  ;;  %s627_s0 = scalar_lea.vmem [#allocation7], %s2797_s3 }
 0x3ac   : > { %v1427_v59 = vsel %vm745_vm1, %v1426_v57, %v1409_v50  ;;  %v1422_v18 = vrot.slane %v1417_v58, 4  ;;  %v1425_v60 = vsel %vm745_vm1, %v1417_v58, %v1424_v17  ;;  %v1906_v50 = vld [vmem:[%s2742_s14 + $0x28] sm:$0xff]  ;;  %s1702_s4 = sshll.u32 %s627_s0, 4  ;;  %s2084_s3 = scalar_lea.hbm %s2795_s25, 8  ;;  %s1703_s4 = int_to_ptr.vmem [resolvable:$true] %s1702_s4 }
 0x3ad   : > { %1435 = vrot.lane.b32.xlu0 %v1427_v59, %s2142_s1  ;;  %1431 = vrot.lane.b32.xlu1 %v1425_v60, %s2143_s24  ;;  %v1493_v21 = vadd.f32 %v1997_v15, %v1492_v20  ;;  %s1690_s1 = scalar_lea.sflag [#allocation4], %s2356_s26 }
 0x3ae   : > { %v1423_v61 = vsel %vm745_vm1, %v1422_v18, %v1405_v55  ;;  %1642 = vmatpush.bf16.msra.mxu1 %v1906_v50  ;;  %v1976_v55 = vld [vmem:[%s2741_s13] ss:$0 sm:$0xff] }
 0x3af   : > { %v2635_v23 = vsel %vm1494_vm6, %v1997_v15, %v1493_v21 }
 0x3b2   : > { %1643 = vmatpush.bf16.msra.mxu1 %v1905_v51 }
 0x3b6   : > { %1644 = vmatpush.bf16.msra.mxu1 %v1904_v52 }
 0x3ba   : > { %1645 = vmatpush.bf16.msra.mxu1 %v1903_v53 }
 0x3be   : > { %1646 = vmatpush.bf16.msra.mxu1 %v1902_v11 }
 0x3c2   : > { %1647 = vmatpush.bf16.msra.mxu1 %v1901_v54 }
 0x405   : > { %v1440_v22 = vpop.permute.xlu2 %1439 }
 0x41f   : > { %v1436_v63 = vpop.permute.xlu0 %1435  ;;  %v1432_v0 = vpop.permute.xlu1 %1431 }
 0x420   : > { %v1442_v1 = vsel %vm1107_vm2, %v1423_v61, %v1432_v0 }
 0x421   : > { %v1444_v2 = vsel %vm1443_vm4, %v1442_v1, %v1436_v63  ;;  %v1977_v1 = vld [vmem:[%s2790_s19] ss:$0 sm:$0xff]  ;;  %s1700_s19 = scalar_lea.hbm %s2794_s29, %s1888_s23 }
 0x422   : > { %v1446_v3 = vsel %vm1445_vm5, %v1444_v2, %v1440_v22  ;;  %s1704_s5 = sshll.u32 %s1700_s19, 4  ;;  %s1705_s5 = int_to_ptr.hbm [resolvable:$true] %s1704_s5 }
 0x423   : > { %v1447_v5 = vpack.c.bf16 %v1446_v3, %v1446_v3  ;;  %s2078_s24 = sshra.s32 %s1705_s5, 4  ;;  %s2079_s24 = int_to_ptr.hbm [resolvable:$true] %s2078_s24 }
 0x424   : > { %p2085_p10 = scmp.lt.s32.totalorder %s2079_s24, %s2795_s25 }
 0x425   : > { %1845 = vmatmul.msk.bf16.vlgmr.msra.gmra.mxu3 %vm651_vm0, %v1447_v5 }
 0x4a8   : > { %v1480_v8 = vpop.f32.mrf.mxu3 }
 0x4a9   : > { %v1481_v9 = vadd.f32 %v1973_v6, %v1480_v8 }
 0x4ab   : > { %v1485_v10 = vadd.f32 %v1484_v7, %v1481_v9 }
 0x4ad   : > { %v1486_v12 = vsel %vm651_vm0, %v1485_v10, 0.0 }
 0x4ae   : > { %1487 = vadd.xlane.f32.xlu0 %v1486_v12 }
 0x4b0   : > { %v1482_v13 = vpop.f32.mrf.mxu3 }
 0x521   : > { %v1488_v24 = vpop.xlane.xlu0 %1487 }
 0x522   : > { %v1496_v4 = vmul.f32 %v2635_v23, %v1488_v24 }
 0x524   : > { %v1497_v26 = vsub.f32 %v1485_v10, %v1496_v4 }
 0x526   : > { %v1498_v27 = vmul.f32 %v1497_v26, %v1497_v26 }
 0x528   : > { %v1499_v28 = vsel %vm651_vm0, %v1498_v27, 0.0 }
 0x529   : > { %1500 = vadd.xlane.f32.xlu1 %v1499_v28 }
 0x59c   : > { %v1501_v32 = vpop.xlane.xlu1 %1500 }
 0x59d   : > { %v1502_v33 = vmul.f32 %v1501_v32, %v2635_v23 }
 0x59f   : > { %v1503_v34 = vadd.f32 1e-05, %v1502_v33 }
 0x5a1   : > { %1998 = vrsqrt.f32 %v1503_v34  ;;  %vm1510_vm8 = vweird.f32 %v1503_v34 }
 0x5a7   : > { %v1999_v35 = vpop.eup %1998 }
 0x5a8   : > { %v1505_v36 = vmul.f32 %v1999_v35, %v1503_v34  ;;  %vm1511_vm7 = vweird.f32 %v1999_v35 }
 0x5a9   : > { %vm1512_vm9 = vmor %vm1510_vm8, %vm1511_vm7 }
 0x5aa   : > { %v1506_v37 = vmul.f32 %v1999_v35, %v1505_v36 }
 0x5ac   : > { %v1507_v39 = vmul.f32 0.5, %v1506_v37 }
 0x5ae   : > { %v1508_v40 = vsub.f32 1.5, %v1507_v39 }
 0x5b0   : > { %v1509_v41 = vmul.f32 %v1999_v35, %v1508_v40 }
 0x5b2   : > { %v1513_v43 = vsel %vm1512_vm9, %v1999_v35, %v1509_v41 }
 0x5b3   : > { %v1514_v45 = vmul.f32 %v1513_v43, %v1497_v26  ;;  %v1978_v26 = vld [vmem:[%s2792_s20] ss:$0 sm:$0xff]  ;;  %s2080_s20 = scalar_lea.hbm %s2079_s24, 4 }
 0x5b4   : > { %p2081_p6 = scmp.ne.s32.totalorder %s2079_s24, %s2080_s20  ;;  %p2086_p2 = scmp.lt.s32.totalorder %s2084_s3, %s2080_s20 }
 0x5b5   : > { %v1519_v46 = vmul.f32 %v1974_v42, %v1514_v45 }
 0x5b6   : > { %p2082_p13 = pnand %p2081_p6, %p2290_p11  ;;  %p2087_p9 = por %p2086_p2, %p2085_p10 }
 0x5b7   : > { %v1524_v47 = vadd.f32 %v1975_v44, %v1519_v46 }
 0x5b8   : > { %p2083_p3 = pneg %p2082_p13 }
 0x5b9   : > { %v1525_v48 = vpack.c.bf16 %v1524_v47, %v1524_v47 }
 0x5ba   : > { %p2088_p0 = pnand %p2087_p9, %p2083_p3 }
 0x5bb   : > { %1854 = vmatmul.msk.bf16.vlgmr.msrb.gmra.mxu0 %vm651_vm0, %v1525_v48 }
 0x638   : > { %v1558_v56 = vpop.f32.mrf.mxu0 }
 0x639   : > { %v1559_v25 = vadd.f32 %v1976_v55, %v1558_v56 }
 0x63b   : > { %v1562_v57 = vmul.f32 %v1559_v25, %v1559_v25 }
 0x63d   : > { %v1563_v58 = vmul.f32 %v1562_v57, %v1559_v25 }
 0x63f   : > { %v1564_v17 = vmul.f32 0.044715, %v1563_v58 }
 0x640   : > { %v1560_v59 = vpop.f32.mrf.mxu0 }
 0x641   : > { %v1565_v18 = vadd.f32 %v1564_v17, %v1559_v25 }
 0x643   : > { %v1566_v60 = vmul.f32 0.7978846, %v1565_v18 }
 0x645   : > { %2000 = vtanh.f32 %v1566_v60 }
 0x64b   : > { %v2001_v61 = vpop.eup %2000 }
 0x64c   : > { %v1568_v62 = vadd.f32 1.0, %v2001_v61 }
 0x64e   : > { %v1569_v38 = vmul.f32 0.5, %v1568_v62 }
 0x650   : > { %v1570_v63 = vmul.f32 %v1569_v38, %v1559_v25 }
 0x652   : > { %v1571_v0 = vpack.c.bf16 %v1570_v63, %v1570_v63 }
 0x654   : > { %1648 = vmatmul.bf16.vlgmr.msra.gmra.mxu1 %v1571_v0 }
 0x6d1   : > { %v1649_v22 = vpop.f32.mrf.mxu1 }
 0x6d2   : > { %v1650_v2 = vadd.f32 %v1977_v1, %v1649_v22 }
 0x6d4   : > { %v1653_v3 = vadd.f32 %v1650_v2, %v1524_v47 }
 0x6d6   : > { %v1654_v5 = vsel %vm651_vm0, %v1653_v3, 0.0 }
 0x6d7   : > { %1655 = vadd.xlane.f32.xlu2 %v1654_v5 }
 0x6d9   : > { %v1651_v6 = vpop.f32.mrf.mxu1 }
 0x74a   : > { %v1656_v7 = vpop.xlane.xlu2 %1655 }
 0x74b   : > { %v1657_v8 = vmul.f32 %v1656_v7, %v2635_v23 }
 0x74d   : > { %v1658_v9 = vsub.f32 %v1653_v3, %v1657_v8 }
 0x74f   : > { %v1659_v10 = vmul.f32 %v1658_v9, %v1658_v9 }
 0x751   : > { %v1660_v12 = vsel %vm651_vm0, %v1659_v10, 0.0 }
 0x752   : > { %1661 = vadd.xlane.f32.xlu0 %v1660_v12 }
 0x7c5   : > { %v1662_v13 = vpop.xlane.xlu0 %1661 }
 0x7c6   : > { %v1663_v14 = vmul.f32 %v1662_v13, %v2635_v23  ;;  %v1979_v23 = vld [vmem:[%s2793_s2] ss:$0 sm:$0xff] }
 0x7c8   : > { %v1664_v15 = vadd.f32 1e-05, %v1663_v14 }
 0x7ca   : > { %2002 = vrsqrt.f32 %v1664_v15  ;;  %vm1671_vm11 = vweird.f32 %v1664_v15 }
 0x7d0   : > { %v2003_v16 = vpop.eup %2002 }
 0x7d1   : > { %v1666_v19 = vmul.f32 %v2003_v16, %v1664_v15  ;;  %vm1672_vm10 = vweird.f32 %v2003_v16 }
 0x7d2   : > { %vm1673_vm12 = vmor %vm1671_vm11, %vm1672_vm10 }
 0x7d3   : > { %v1667_v20 = vmul.f32 %v2003_v16, %v1666_v19 }
 0x7d5   : > { %v1668_v21 = vmul.f32 0.5, %v1667_v20 }
 0x7d7   : > { %v1669_v24 = vsub.f32 1.5, %v1668_v21 }
 0x7d9   : > { %v1670_v4 = vmul.f32 %v2003_v16, %v1669_v24 }
 0x7db   : > { %v1674_v27 = vsel %vm1673_vm12, %v2003_v16, %v1670_v4 }
 0x7dc   : > { %v1675_v28 = vmul.f32 %v1674_v27, %v1658_v9 }
 0x7de   : > { %v1680_v29 = vmul.f32 %v1978_v26, %v1675_v28 }
 0x7e0   : > { %v1685_v30 = vadd.f32 %v1979_v23, %v1680_v29 }
 0x7e2   : > { %v1686_v31 = vpack.c.bf16 %v1685_v30, %v1685_v30 }
 0x7e4   : > { %1688 = vst.msk [vmem:[%s627_s0] sm:$0xf] %vm1687_vm13, %v1686_v31 }
 0x7e5   : > { %2091 = shalt.err (!%p2088_p0)
}
 0x7e6   : > { %1913 = dma.vmem_to_hbm [thread:$0]  (%p2290_p11), %s1703_s4, 64, %s1705_s5, %s1690_s1  }
 0x7e7 PF: > { %s2798_s26 = sld [smem:[#allocation11_spill]]  ;;  %p2800_p1 = scmp.ge.s32.totalorder %s2134_s30, 2 }
 0x7e9   : > { %p1923_p4 = pnand %p2800_p1, %p2294_p12 }
 0x7eb   : > { %p1924_p7 = pneg %p1923_p4 }
 0x7ed   : > { %s1716_s18 = sand.u32 1, %s2798_s26  }
 0x7ee   : > { %s1717_s29 = scalar_lea.sflag [#allocation4], %s1716_s18 }
 0x7ef   : > { %2117 = dma.done.wait (%p1924_p7), %s1717_s29, 64  }
 0x7f0   : > { %2119 = vsyncadd (%p1924_p7), %s1717_s29, 4294967232  ;;  %s2801_s30 = sld [smem:[#allocation14_spill]]  ;;  %s2804_s27 = smov %s2126_s28 }
 0x7f1   : > { %s2802_s19 = sld [smem:[#allocation12_spill]] }
 0x7f2   : > { %s2803_s29 = sld [smem:[#allocation15_spill]] }
 0x7f6   : > { %p34_p5 = scmp.ge.s32.totalorder %s2801_s30, 4  }
 0x7f7   : > { %s2805_s28 = smov %s2802_s19 }
 0x7f8   :  { %36 = sbr.rel (!%p34_p5) target bundleno = 18 (0x12), region = 150 }
 0x7fd   :  { %1723 = vsyncpa [#allocation3], 1 }
 0x7fe   :  { %1725 = vsyncpa [#allocation3 + $0x1], 1 }
 0x7ff   :  { %1726 = vsyncpa [#allocation6], 1 }
 0x800   :  { %1728 = vsyncpa [#allocation6 + $0x1], 1 }
 0x801   :  { %1729 = vsyncpa [#allocation4], 1 }
 0x802   :  { %1731 = vsyncpa [#allocation4 + $0x1], 1 }

</bundles_post_ra>
